<compile_context>
chip_gen: v7x
topology: tpu7x:2x2x1
jax: 0.10.0
libtpu: 0.0.40
codegen_flags: <defaults>
</compile_context>

<pallas_src>
import math
import functools

import jax
import jax.numpy as jnp
from jax.experimental import pallas as pl
from jax.experimental.pallas import tpu as pltpu


# ----------------------------------------------------------------------------
# Hardware-aware helpers
# ----------------------------------------------------------------------------

def _rup(x, m):
    return -(-x // m) * m


@functools.lru_cache(maxsize=None)
def _vmem_limit_bytes():
    """Per-generation VMEM limit: ~3/4 of physical capacity, capped at 100 MiB."""
    try:
        cap = int(pltpu.get_tpu_info().vmem_capacity_bytes)
    except Exception:
        cap = 64 * 1024 * 1024          # conservative fallback (v7x-safe)
    return int(min(max(cap * 3 // 4, 32 * 1024 * 1024), 100 * 1024 * 1024))


def _cp(*sem):
    return pltpu.CompilerParams(dimension_semantics=sem,
                                vmem_limit_bytes=_vmem_limit_bytes())


@functools.lru_cache(maxsize=None)
def _single_buffer_ok():
    """Probe whether pipeline_mode=pl.Buffered(1) is usable on this jax/TPU."""
    if not hasattr(pl, "Buffered"):
        return False

    def _probe(x_ref, o_ref):
        o_ref[...] = x_ref[...] * 2.0

    try:
        out = pl.pallas_call(
            _probe,
            out_shape=jax.ShapeDtypeStruct((16, 128), jnp.float32),
            grid=(2,),
            in_specs=[pl.BlockSpec((8, 128), lambda i: (0, 0),
                                   pipeline_mode=pl.Buffered(1))],
            out_specs=pl.BlockSpec((8, 128), lambda i: (i, 0)),
        )(jnp.ones((8, 128), jnp.float32))
        jax.block_until_ready(out)
        return True
    except Exception:
        return False


def _resident_spec(shape):
    """Grid-invariant (weight) block on a 1-D row grid: single-buffered when
    supported — halves the resident weight VMEM footprint (critical on v7x)."""
    assert len(shape) == 2
    if _single_buffer_ok():
        return pl.BlockSpec(shape, lambda i: (0, 0), pipeline_mode=pl.Buffered(1))
    return pl.BlockSpec(shape, lambda i: (0, 0))


def _row_plan(m, pref=256):
    """(tile, padded) for a row/sublane dimension: big fixed tiles, pad up."""
    if m <= pref:
        t = _rup(m, 8)
        return t, t
    return pref, _rup(m, pref)


def _lane_plan(n, pref=512):
    """(tile, padded) for a lane (minor) dimension: full dim if <128, otherwise
    a lane-dense 128-multiple tile (widest legal stores, pad up to the tile)."""
    if n < 128:
        return n, n
    t = min(pref, _rup(n, 128))
    return t, _rup(n, t)


# ----------------------------------------------------------------------------
# Kernels
# ----------------------------------------------------------------------------

def _linear_kernel(x_ref, w_ref, b_ref, o_ref, acc_ref, *, activation):
    """Tiled y = act(x @ w + b); grid = (M-tiles, N-tiles, K-tiles)."""
    @pl.when(pl.program_id(2) == 0)
    def _():
        acc_ref[...] = jnp.zeros_like(acc_ref)

    acc_ref[...] += jnp.dot(x_ref[...].astype(jnp.bfloat16), w_ref[...],
                            preferred_element_type=jnp.float32)

    @pl.when(pl.program_id(2) == pl.num_programs(2) - 1)
    def _():
        y = acc_ref[...] + b_ref[...]
        if activation == "relu":
            y = jnp.maximum(y, 0.0)
        o_ref[...] = y.astype(o_ref.dtype)


def _layernorm(z, g, b):
    mu = jnp.mean(z, axis=-1, keepdims=True)
    zc = z - mu
    var = jnp.mean(zc * zc, axis=-1, keepdims=True)
    return zc * jax.lax.rsqrt(var + 1e-5) * g + b


def _proj_add_ln_kernel(a_ref, x_ref, w_ref, b_ref, g_ref, bb_ref, o_ref):
    """LayerNorm(x + a @ Wo + bo) — fused attention out-proj + residual + LN."""
    y = jnp.dot(a_ref[...], w_ref[...],
                preferred_element_type=jnp.float32) + b_ref[...]
    z = x_ref[...] + y
    o_ref[...] = _layernorm(z, g_ref[...], bb_ref[...]).astype(o_ref.dtype)


def _ffn_ln_kernel(x_ref, w1_ref, b1_ref, w2_ref, b2_ref, g_ref, bb_ref, o_ref):
    """LayerNorm(x + relu(x@w1+b1)@w2+b2) — intermediate stays in VMEM."""
    x = x_ref[...]
    h = jnp.dot(x.astype(jnp.bfloat16), w1_ref[...],
                preferred_element_type=jnp.float32) + b1_ref[...]
    h = jnp.maximum(h, 0.0)
    y = jnp.dot(h.astype(jnp.bfloat16), w2_ref[...],
                preferred_element_type=jnp.float32) + b2_ref[...]
    z = x + y
    o_ref[...] = _layernorm(z, g_ref[...], bb_ref[...]).astype(o_ref.dtype)


def _ln_kernel(x_ref, g_ref, b_ref, o_ref):
    o_ref[...] = _layernorm(x_ref[...], g_ref[...], b_ref[...]).astype(o_ref.dtype)


def _mha_body(q, k, v, o_ref, num_heads, scale):
    """q: (Sq, E) bf16, k/v: (Sk, E) bf16 -> per-head results stored into o_ref."""
    E = q.shape[-1]
    dh = E // num_heads
    # TODO(synk): for long sequences convert to a flash-style kernel (kv-tile
    # grid axis + online-softmax m/l/acc scratch) and a lane-dense (B,H,S,dh)
    # qkv layout / per-head grid axis (extra v7x megacore parallelism).
    for h in range(num_heads):
        lo = h * dh
        qh = q[:, lo:lo + dh] * scale           # scale folded into q (S*dh muls)
        kh = k[:, lo:lo + dh]
        vh = v[:, lo:lo + dh]
        s = jax.lax.dot_general(qh, kh, (((1,), (1,)), ((), ())),
                                preferred_element_type=jnp.float32)
        s = s - jnp.max(s, axis=-1, keepdims=True)
        p = jnp.exp(s)
        p = p * pl.reciprocal(jnp.sum(p, axis=-1, keepdims=True), approx=True)
        oh = jnp.dot(p.astype(jnp.bfloat16), vh, preferred_element_type=jnp.float32)
        o_ref[0, :, lo:lo + dh] = oh.astype(o_ref.dtype)   # direct per-head store


def _self_mha_kernel(qkv_ref, o_ref, *, num_heads, scale):
    qkv = qkv_ref[0]                       # (S, 3E) bf16
    E = qkv.shape[-1] // 3
    _mha_body(qkv[:, :E], qkv[:, E:2 * E], qkv[:, 2 * E:], o_ref, num_heads, scale)


def _cross_mha_kernel(q_ref, kv_ref, o_ref, *, num_heads, scale):
    q = q_ref[0]                           # (Sq, E) bf16
    kv = kv_ref[0]                         # (Sk, 2E) bf16
    E = q.shape[-1]
    _mha_body(q, kv[:, :E], kv[:, E:], o_ref, num_heads, scale)


# ----------------------------------------------------------------------------
# Wrappers (tiling / padding plans)
# ----------------------------------------------------------------------------

def linear(x, lin, n_out, activation=None, out_dtype=jnp.bfloat16):
    """x: (M, K) -> act(x @ w + b)[:, :n_out]; weights pre-padded bf16 at init.
    Tiled over (M rows, lane-dense N cols, K reduction with f32 accumulator)."""
    w, b = lin["w"], lin["b"]
    Kp, Np = w.shape
    M, K = x.shape
    TK, Kp2 = _lane_plan(K)
    assert Kp2 == Kp, "weight was packed with a different K plan"
    TN = _lane_plan(Np)[0]
    TM, Mp = _row_plan(M)

    xp = x
    if Mp != M or Kp != K:
        xp = jnp.pad(x, ((0, Mp - M), (0, Kp - K)))

    out = pl.pallas_call(
        functools.partial(_linear_kernel, activation=activation),
        out_shape=jax.ShapeDtypeStruct((Mp, Np), out_dtype),
        grid=(Mp // TM, Np // TN, Kp // TK),
        in_specs=[
            pl.BlockSpec((TM, TK), lambda i, j, k: (i, k)),
            pl.BlockSpec((TK, TN), lambda i, j, k: (k, j)),
            pl.BlockSpec((1, TN), lambda i, j, k: (0, j)),
        ],
        out_specs=pl.BlockSpec((TM, TN), lambda i, j, k: (i, j)),
        scratch_shapes=[pltpu.VMEM((TM, TN), jnp.float32)],
        compiler_params=_cp("parallel", "parallel", "arbitrary"),
    )(xp, w, b)

    if Mp != M or Np != n_out:
        out = out[:M, :n_out]
    return out


def proj_add_ln(a, x, w, b, gamma, beta):
    """LayerNorm(x + a @ w + b), row-tiled; a bf16, residual x f32, w bf16."""
    M, E = a.shape
    TM, Mp = _row_plan(M)
    if Mp != M:
        a = jnp.pad(a, ((0, Mp - M), (0, 0)))
        x = jnp.pad(x, ((0, Mp - M), (0, 0)))
    out = pl.pallas_call(
        _proj_add_ln_kernel,
        out_shape=jax.ShapeDtypeStruct((Mp, E), jnp.float32),
        grid=(Mp // TM,),
        in_specs=[
            pl.BlockSpec((TM, E), lambda i: (i, 0)),
            pl.BlockSpec((TM, E), lambda i: (i, 0)),
            _resident_spec((E, E)),
            pl.BlockSpec((1, E), lambda i: (0, 0)),
            pl.BlockSpec((1, E), lambda i: (0, 0)),
            pl.BlockSpec((1, E), lambda i: (0, 0)),
        ],
        out_specs=pl.BlockSpec((TM, E), lambda i: (i, 0)),
        compiler_params=_cp("parallel"),
    )(a, x, w, b, gamma, beta)
    return out[:M] if Mp != M else out


def ffn_add_ln(x, w1, b1, w2, b2, gamma, beta):
    """LayerNorm(x + relu(x@w1+b1)@w2+b2); bf16 resident weights, hidden in VMEM."""
    M, E = x.shape
    F = w1.shape[1]
    TM, Mp = _row_plan(M)
    if Mp != M:
        x = jnp.pad(x, ((0, Mp - M), (0, 0)))
    out = pl.pallas_call(
        _ffn_ln_kernel,
        out_shape=jax.ShapeDtypeStruct((Mp, E), jnp.float32),
        grid=(Mp // TM,),
        in_specs=[
            pl.BlockSpec((TM, E), lambda i: (i, 0)),
            _resident_spec((E, F)),
            pl.BlockSpec((1, F), lambda i: (0, 0)),
            _resident_spec((F, E)),
            pl.BlockSpec((1, E), lambda i: (0, 0)),
            pl.BlockSpec((1, E), lambda i: (0, 0)),
            pl.BlockSpec((1, E), lambda i: (0, 0)),
        ],
        out_specs=pl.BlockSpec((TM, E), lambda i: (i, 0)),
        compiler_params=_cp("parallel"),
    )(x, w1, b1, w2, b2, gamma, beta)
    return out[:M] if Mp != M else out


def layer_norm(x, gamma, beta):
    """LayerNorm(x) without a residual stream (final encoder/decoder norms)."""
    M, E = x.shape
    TM, Mp = _row_plan(M)
    if Mp != M:
        x = jnp.pad(x, ((0, Mp - M), (0, 0)))
    out = pl.pallas_call(
        _ln_kernel,
        out_shape=jax.ShapeDtypeStruct((Mp, E), jnp.float32),
        grid=(Mp // TM,),
        in_specs=[
            pl.BlockSpec((TM, E), lambda i: (i, 0)),
            pl.BlockSpec((1, E), lambda i: (0, 0)),
            pl.BlockSpec((1, E), lambda i: (0, 0)),
        ],
        out_specs=pl.BlockSpec((TM, E), lambda i: (i, 0)),
        compiler_params=_cp("parallel"),
    )(x, gamma, beta)
    return out[:M] if Mp != M else out


def self_mha(qkv, num_heads):
    """qkv: (B, S, 3E) bf16 fused projection -> attention output (B, S, E) bf16."""
    B, S, E3 = qkv.shape
    E = E3 // 3
    scale = 1.0 / math.sqrt(E // num_heads)
    return pl.pallas_call(
        functools.partial(_self_mha_kernel, num_heads=num_heads, scale=scale),
        out_shape=jax.ShapeDtypeStruct((B, S, E), jnp.bfloat16),
        grid=(B,),
        in_specs=[pl.BlockSpec((1, S, E3), lambda b: (b, 0, 0))],
        out_specs=pl.BlockSpec((1, S, E), lambda b: (b, 0, 0)),
        compiler_params=_cp("parallel"),
    )(qkv)


def cross_mha(q, kv, num_heads):
    """q: (B, Sq, E) bf16, kv: (B, Sk, 2E) bf16 -> (B, Sq, E) bf16."""
    B, Sq, E = q.shape
    Sk = kv.shape[1]
    scale = 1.0 / math.sqrt(E // num_heads)
    return pl.pallas_call(
        functools.partial(_cross_mha_kernel, num_heads=num_heads, scale=scale),
        out_shape=jax.ShapeDtypeStruct((B, Sq, E), jnp.bfloat16),
        grid=(B,),
        in_specs=[pl.BlockSpec((1, Sq, E), lambda b: (b, 0, 0)),
                  pl.BlockSpec((1, Sk, 2 * E), lambda b: (b, 0, 0))],
        out_specs=pl.BlockSpec((1, Sq, E), lambda b: (b, 0, 0)),
        compiler_params=_cp("parallel"),
    )(q, kv)


# ----------------------------------------------------------------------------
# Model (eval mode, src_mask/tgt_mask = None path; dropout == identity)
# ----------------------------------------------------------------------------

def encoder_layer(x, p, num_heads):
    B, S, E = x.shape
    x2 = x.reshape(B * S, E)
    qkv = linear(x2, p["qkv"], 3 * E).reshape(B, S, 3 * E)          # bf16
    a = self_mha(qkv, num_heads).reshape(B * S, E)                  # bf16
    x2 = proj_add_ln(a, x2, p["wo"], p["bo"], p["norm1_g"], p["norm1_b"])
    x2 = ffn_add_ln(x2, p["w1"], p["b1"], p["w2"], p["b2"],
                    p["norm2_g"], p["norm2_b"])
    return x2.reshape(B, S, E)


def decoder_layer(x, mem, p, num_heads):
    B, T, E = x.shape
    Sm = mem.shape[1]
    x2 = x.reshape(B * T, E)

    # self-attention + norm1   (tgt_mask=None path: no causal mask)
    qkv = linear(x2, p["sa_qkv"], 3 * E).reshape(B, T, 3 * E)
    a = self_mha(qkv, num_heads).reshape(B * T, E)
    x2 = proj_add_ln(a, x2, p["sa_wo"], p["sa_bo"], p["norm1_g"], p["norm1_b"])

    # cross-attention + norm2
    q = linear(x2, p["ca_q"], E).reshape(B, T, E)
    kv = linear(mem.reshape(B * Sm, E), p["ca_kv"], 2 * E).reshape(B, Sm, 2 * E)
    c = cross_mha(q, kv, num_heads).reshape(B * T, E)
    x2 = proj_add_ln(c, x2, p["ca_wo"], p["ca_bo"], p["norm2_g"], p["norm2_b"])

    # FFN + norm3
    x2 = ffn_add_ln(x2, p["w1"], p["b1"], p["w2"], p["b2"],
                    p["norm3_g"], p["norm3_b"])
    return x2.reshape(B, T, E)


def make_positional_encoding(max_len, embed_dim):
    position = jnp.arange(max_len, dtype=jnp.float32)[:, None]
    div_term = jnp.exp(jnp.arange(0, embed_dim, 2, dtype=jnp.float32)
                       * (-math.log(10000.0) / embed_dim))
    pe = jnp.zeros((max_len, embed_dim), jnp.float32)
    pe = pe.at[:, 0::2].set(jnp.sin(position * div_term))
    pe = pe.at[:, 1::2].set(jnp.cos(position * div_term))
    return pe


def transformer_forward(params, src, tgt, num_heads):
    # src: (S, N) int32, tgt: (T, N) int32  (PyTorch batch_first=False layout)
    pe = params["pe"]
    S, N = src.shape
    T = tgt.shape[0]
    E = params["src_emb"].shape[1]
    V = params["tgt_emb"].shape[0]

    # embedding gather (glue) + one transpose to internal batch-major layout
    src_e = jnp.take(params["src_emb"], src, axis=0).transpose(1, 0, 2)  # (N,S,E)
    tgt_e = jnp.take(params["tgt_emb"], tgt, axis=0).transpose(1, 0, 2)  # (N,T,E)

    # Reference PositionalEncoding: x + pe[:, :x.size(1), :] on (S,N,E) input,
    # i.e. pe indexed by the *batch* dim and broadcast over seq — reproduced.
    src_e = src_e + pe[:N][:, None, :]
    tgt_e = tgt_e + pe[:N][:, None, :]

    # encoder stack + final encoder norm
    mem = src_e
    for lp in params["enc"]:
        mem = encoder_layer(mem, lp, num_heads)
    mem = layer_norm(mem.reshape(N * S, E),
                     params["enc_norm_g"], params["enc_norm_b"]).reshape(N, S, E)

    # decoder stack + final decoder norm
    x = tgt_e
    for lp in params["dec"]:
        x = decoder_layer(x, mem, lp, num_heads)
    x2 = layer_norm(x.reshape(N * T, E),
                    params["dec_norm_g"], params["dec_norm_b"])

    # Reorder the E-wide activations to (T*N, E) *before* fc_out so the big
    # logits tensor is written directly in (T, N, V) order (no logits transpose).
    x2 = x2.reshape(N, T, E).transpose(1, 0, 2).reshape(T * N, E)
    logits = linear(x2, params["fc_out"], V, out_dtype=jnp.float32)   # (T*N, V)
    return logits.reshape(T, N, V)


# ----------------------------------------------------------------------------
# Deterministic parameter initialization (logical shapes follow the torch
# module; weights cast to bf16 and pre-padded to tile multiples ONCE here)
# ----------------------------------------------------------------------------

def _pack_linear(w, b):
    """Pre-pad a (K,N) weight + (N,) bias to tile multiples; store weight bf16."""
    K, N = w.shape
    _, Kp = _lane_plan(K)
    _, Np = _lane_plan(N)
    wp = jnp.pad(w, ((0, Kp - K), (0, Np - N))).astype(jnp.bfloat16)
    bp = jnp.pad(b, (0, Np - N)).astype(jnp.float32).reshape(1, Np)
    return dict(w=wp, b=bp)


def init_params(key, src_vocab, tgt_vocab, embed_dim, ff_dim, num_layers, max_len=5000):
    keys = iter(jax.random.split(key, 4096))
    E, F = embed_dim, ff_dim

    def nrm(shape, scale=0.02):
        return scale * jax.random.normal(next(keys), shape, jnp.float32)

    def lin(k_in, n_out):
        return _pack_linear(nrm((k_in, n_out)), nrm((n_out,)))

    def wmat(k_in, n_out):
        return nrm((k_in, n_out)).astype(jnp.bfloat16)

    def bias(n):
        return nrm((n,)).reshape(1, n)

    def ln_pair():
        return jnp.ones((1, E), jnp.float32), jnp.zeros((1, E), jnp.float32)

    def enc_layer():
        n1g, n1b = ln_pair(); n2g, n2b = ln_pair()
        return dict(qkv=lin(E, 3 * E), wo=wmat(E, E), bo=bias(E),
                    w1=wmat(E, F), b1=bias(F), w2=wmat(F, E), b2=bias(E),
                    norm1_g=n1g, norm1_b=n1b, norm2_g=n2g, norm2_b=n2b)

    def dec_layer():
        n1g, n1b = ln_pair(); n2g, n2b = ln_pair(); n3g, n3b = ln_pair()
        return dict(sa_qkv=lin(E, 3 * E), sa_wo=wmat(E, E), sa_bo=bias(E),
                    ca_q=lin(E, E), ca_kv=lin(E, 2 * E),
                    ca_wo=wmat(E, E), ca_bo=bias(E),
                    w1=wmat(E, F), b1=bias(F), w2=wmat(F, E), b2=bias(E),
                    norm1_g=n1g, norm1_b=n1b, norm2_g=n2g, norm2_b=n2b,
                    norm3_g=n3g, norm3_b=n3b)

    eg, eb = ln_pair()
    dg, db = ln_pair()
    return dict(
        src_emb=nrm((src_vocab, E), 1.0),
        tgt_emb=nrm((tgt_vocab, E), 1.0),
        pe=make_positional_encoding(max_len, E),
        enc=[enc_layer() for _ in range(num_layers)],
        dec=[dec_layer() for _ in range(num_layers)],
        enc_norm_g=eg, enc_norm_b=eb,
        dec_norm_g=dg, dec_norm_b=db,
        fc_out=_pack_linear(nrm((E, tgt_vocab)), nrm((tgt_vocab,))),
    )


# ----------------------------------------------------------------------------
# Demo
# ----------------------------------------------------------------------------

if __name__ == "__main__":
    SRC_VOCAB, TGT_VOCAB = 48, 56
    EMBED_DIM, NUM_HEADS, FF_DIM, NUM_LAYERS = 32, 4, 64, 2
    S, T, N = 8, 8, 2   # src seq, tgt seq, batch

    assert EMBED_DIM % NUM_HEADS == 0

    key = jax.random.PRNGKey(0)
    k_params, k_src, k_tgt = jax.random.split(key, 3)

    params = init_params(k_params, SRC_VOCAB, TGT_VOCAB, EMBED_DIM, FF_DIM, NUM_LAYERS)
    src = jax.random.randint(k_src, (S, N), 0, SRC_VOCAB, dtype=jnp.int32)
    tgt = jax.random.randint(k_tgt, (T, N), 0, TGT_VOCAB, dtype=jnp.int32)

    _single_buffer_ok()          # warm the Buffered(1) capability probe (eager)

    # TODO(synk): dropout treated as identity (eval mode); src_mask/tgt_mask=None path only.
    fwd = jax.jit(functools.partial(transformer_forward, num_heads=NUM_HEADS))
    out = fwd(params, src, tgt)
    out = jax.block_until_ready(out)
    assert out.shape == (T, N, TGT_VOCAB) and out.dtype == jnp.float32
    print("KERNEL_OK")
</pallas_src>

<mosaic_0001>
module attributes {stable_mosaic.version = 11 : i64} {
  func.func @_probe(%arg0: i32, %arg1: memref<8x128xf32, #tpu.memory_space<vmem>>, %arg2: memref<8x128xf32, #tpu.memory_space<vmem>>) attributes {dimension_semantics = [#tpu.dimension_semantics<arbitrary>], iteration_bounds = array<i64: 2>, scalar_prefetch = 0 : i64, scratch_operands = 0 : i64, tpu.core_type = #tpu.core_type<tc>, window_params = [{pipeline_mode = #tpu.pipeline_mode<synchronous>, transform_indices = @transform_0, window_bounds = array<i64: 8, 128>}, {transform_indices = @transform_1, window_bounds = array<i64: 8, 128>}]} {
    %c0 = arith.constant 0 : index
    %c0_0 = arith.constant 0 : index
    %0 = vector.load %arg1[%c0, %c0_0] : memref<8x128xf32, #tpu.memory_space<vmem>>, vector<8x128xf32>
    %cst = arith.constant 2.000000e+00 : f32
    %1 = vector.broadcast %cst : f32 to vector<8x128xf32>
    %2 = arith.mulf %0, %1 : vector<8x128xf32>
    %c0_1 = arith.constant 0 : index
    %c0_2 = arith.constant 0 : index
    %3 = vector.load %arg2[%c0_1, %c0_2] : memref<8x128xf32, #tpu.memory_space<vmem>>, vector<8x128xf32>
    tpu.vector_store %arg2[%c0_1, %c0_2], %2 {strides = array<i32>} : memref<8x128xf32, #tpu.memory_space<vmem>>, vector<8x128xf32>,
    return
  }
  func.func @transform_0(%arg0: i32) -> (i32, i32) {
    %c0_i32 = arith.constant 0 : i32
    %c0_i32_0 = arith.constant 0 : i32
    %c0_i32_1 = arith.constant 0 : i32
    return %c0_i32, %c0_i32_0 : i32, i32
  }
  func.func @transform_1(%arg0: i32) -> (i32, i32) {
    %c0_i32 = arith.constant 0 : i32
    %c0_i32_0 = arith.constant 0 : i32
    return %arg0, %c0_i32 : i32, i32
  }
}

module attributes {stable_mosaic.version = 11 : i64} {
  func.func @_proj_add_ln_kernel(%arg0: i32, %arg1: memref<16x32xbf16, #tpu.memory_space<vmem>>, %arg2: memref<16x32xf32, #tpu.memory_space<vmem>>, %arg3: memref<32x32xbf16, #tpu.memory_space<vmem>>, %arg4: memref<1x32xf32, #tpu.memory_space<vmem>>, %arg5: memref<1x32xf32, #tpu.memory_space<vmem>>, %arg6: memref<1x32xf32, #tpu.memory_space<vmem>>, %arg7: memref<16x32xf32, #tpu.memory_space<vmem>>) attributes {dimension_semantics = [#tpu.dimension_semantics<parallel>], iteration_bounds = array<i64: 1>, scalar_prefetch = 0 : i64, scratch_operands = 0 : i64, tpu.core_type = #tpu.core_type<tc>, window_params = [{transform_indices = @transform_0, window_bounds = array<i64: 16, 32>}, {transform_indices = @transform_1, window_bounds = array<i64: 16, 32>}, {pipeline_mode = #tpu.pipeline_mode<synchronous>, transform_indices = @transform_2, window_bounds = array<i64: 32, 32>}, {pipeline_mode = #tpu.pipeline_mode<synchronous>, transform_indices = @transform_3, window_bounds = array<i64: 1, 32>}, {pipeline_mode = #tpu.pipeline_mode<synchronous>, transform_indices = @transform_4, window_bounds = array<i64: 1, 32>}, {pipeline_mode = #tpu.pipeline_mode<synchronous>, transform_indices = @transform_5, window_bounds = array<i64: 1, 32>}, {transform_indices = @transform_6, window_bounds = array<i64: 16, 32>}]} {
    %c0 = arith.constant 0 : index
    %c0_0 = arith.constant 0 : index
    %0 = vector.load %arg1[%c0, %c0_0] : memref<16x32xbf16, #tpu.memory_space<vmem>>, vector<16x32xbf16>
    %c0_1 = arith.constant 0 : index
    %c0_2 = arith.constant 0 : index
    %1 = vector.load %arg3[%c0_1, %c0_2] : memref<32x32xbf16, #tpu.memory_space<vmem>>, vector<32x32xbf16>
    %cst = arith.constant dense<0.000000e+00> : vector<16x32xf32>
    %2 = tpu.matmul %0, %1, %cst {dimension_numbers = #tpu.dot_dimension_numbers<[1], [0], [0], [1], [0, 0, 1, 1], [], []>} : vector<16x32xbf16>, vector<32x32xbf16>, vector<16x32xf32> -> vector<16x32xf32>
    %c0_3 = arith.constant 0 : index
    %c0_4 = arith.constant 0 : index
    %3 = vector.load %arg4[%c0_3, %c0_4] : memref<1x32xf32, #tpu.memory_space<vmem>>, vector<1x32xf32>
    %4 = vector.broadcast %3 : vector<1x32xf32> to vector<16x32xf32>
    %5 = arith.addf %2, %4 : vector<16x32xf32>
    %c0_5 = arith.constant 0 : index
    %c0_6 = arith.constant 0 : index
    %6 = vector.load %arg2[%c0_5, %c0_6] : memref<16x32xf32, #tpu.memory_space<vmem>>, vector<16x32xf32>
    %7 = arith.addf %6, %5 : vector<16x32xf32>
    %c0_7 = arith.constant 0 : index
    %c0_8 = arith.constant 0 : index
    %8 = vector.load %arg5[%c0_7, %c0_8] : memref<1x32xf32, #tpu.memory_space<vmem>>, vector<1x32xf32>
    %c0_9 = arith.constant 0 : index
    %c0_10 = arith.constant 0 : index
    %9 = vector.load %arg6[%c0_9, %c0_10] : memref<1x32xf32, #tpu.memory_space<vmem>>, vector<1x32xf32>
    %cst_11 = arith.constant dense<0.000000e+00> : vector<16xf32>
    %10 = vector.multi_reduction <add>, %7, %cst_11 [1] : vector<16x32xf32> to vector<16xf32>
    %11 = vector.shape_cast %10 : vector<16xf32> to vector<16x1xf32>
    %cst_12 = arith.constant 3.200000e+01 : f32
    %12 = vector.broadcast %cst_12 : f32 to vector<16x1xf32>
    %13 = arith.divf %11, %12 : vector<16x1xf32>
    %14 = vector.broadcast %13 : vector<16x1xf32> to vector<16x32xf32>
    %15 = arith.subf %7, %14 : vector<16x32xf32>
    %16 = arith.mulf %15, %15 : vector<16x32xf32>
    %cst_13 = arith.constant dense<0.000000e+00> : vector<16xf32>
    %17 = vector.multi_reduction <add>, %16, %cst_13 [1] : vector<16x32xf32> to vector<16xf32>
    %18 = vector.shape_cast %17 : vector<16xf32> to vector<16x1xf32>
    %cst_14 = arith.constant 3.200000e+01 : f32
    %19 = vector.broadcast %cst_14 : f32 to vector<16x1xf32>
    %20 = arith.divf %18, %19 : vector<16x1xf32>
    %cst_15 = arith.constant 9.99999974E-6 : f32
    %21 = vector.broadcast %cst_15 : f32 to vector<16x1xf32>
    %22 = arith.addf %20, %21 : vector<16x1xf32>
    %23 = math.rsqrt %22 : vector<16x1xf32>
    %24 = vector.broadcast %23 : vector<16x1xf32> to vector<16x32xf32>
    %25 = arith.mulf %15, %24 : vector<16x32xf32>
    %26 = vector.broadcast %8 : vector<1x32xf32> to vector<16x32xf32>
    %27 = arith.mulf %25, %26 : vector<16x32xf32>
    %28 = vector.broadcast %9 : vector<1x32xf32> to vector<16x32xf32>
    %29 = arith.addf %27, %28 : vector<16x32xf32>
    %c0_16 = arith.constant 0 : index
    %c0_17 = arith.constant 0 : index
    %30 = vector.load %arg7[%c0_16, %c0_17] : memref<16x32xf32, #tpu.memory_space<vmem>>, vector<16x32xf32>
    tpu.vector_store %arg7[%c0_16, %c0_17], %29 {strides = array<i32>} : memref<16x32xf32, #tpu.memory_space<vmem>>, vector<16x32xf32>,
    return
  }
  func.func @transform_0(%arg0: i32) -> (i32, i32) {
    %c0_i32 = arith.constant 0 : i32
    %c0_i32_0 = arith.constant 0 : i32
    return %arg0, %c0_i32 : i32, i32
  }
  func.func @transform_1(%arg0: i32) -> (i32, i32) {
    %c0_i32 = arith.constant 0 : i32
    %c0_i32_0 = arith.constant 0 : i32
    return %arg0, %c0_i32 : i32, i32
  }
  func.func @transform_2(%arg0: i32) -> (i32, i32) {
    %c0_i32 = arith.constant 0 : i32
    %c0_i32_0 = arith.constant 0 : i32
    %c0_i32_1 = arith.constant 0 : i32
    return %c0_i32, %c0_i32_0 : i32, i32
  }
  func.func @transform_3(%arg0: i32) -> (i32, i32) {
    %c0_i32 = arith.constant 0 : i32
    %c0_i32_0 = arith.constant 0 : i32
    %c0_i32_1 = arith.constant 0 : i32
    return %c0_i32, %c0_i32_0 : i32, i32
  }
  func.func @transform_4(%arg0: i32) -> (i32, i32) {
    %c0_i32 = arith.constant 0 : i32
    %c0_i32_0 = arith.constant 0 : i32
    %c0_i32_1 = arith.constant 0 : i32
    return %c0_i32, %c0_i32_0 : i32, i32
  }
  func.func @transform_5(%arg0: i32) -> (i32, i32) {
    %c0_i32 = arith.constant 0 : i32
    %c0_i32_0 = arith.constant 0 : i32
    %c0_i32_1 = arith.constant 0 : i32
    return %c0_i32, %c0_i32_0 : i32, i32
  }
  func.func @transform_6(%arg0: i32) -> (i32, i32) {
    %c0_i32 = arith.constant 0 : i32
    %c0_i32_0 = arith.constant 0 : i32
    return %arg0, %c0_i32 : i32, i32
  }
}

module attributes {stable_mosaic.version = 11 : i64} {
  func.func @_self_mha_kernel(%arg0: i32, %arg1: memref<1x8x96xbf16, #tpu.memory_space<vmem>>, %arg2: memref<1x8x32xbf16, #tpu.memory_space<vmem>>) attributes {dimension_semantics = [#tpu.dimension_semantics<parallel>], iteration_bounds = array<i64: 2>, scalar_prefetch = 0 : i64, scratch_operands = 0 : i64, tpu.core_type = #tpu.core_type<tc>, window_params = [{transform_indices = @transform_0, window_bounds = array<i64: 1, 8, 96>}, {transform_indices = @transform_1, window_bounds = array<i64: 1, 8, 32>}]} {
    %c0 = arith.constant 0 : index
    %c0_0 = arith.constant 0 : index
    %c0_1 = arith.constant 0 : index
    %0 = vector.load %arg1[%c0, %c0_0, %c0_1] : memref<1x8x96xbf16, #tpu.memory_space<vmem>>, vector<1x8x96xbf16>
    %1 = vector.shape_cast %0 : vector<1x8x96xbf16> to vector<8x96xbf16>
    %2 = vector.extract_strided_slice %1 {offsets = [0, 0], sizes = [8, 32], strides = [1, 1]} : vector<8x96xbf16> to vector<8x32xbf16>
    %3 = vector.extract_strided_slice %1 {offsets = [0, 32], sizes = [8, 32], strides = [1, 1]} : vector<8x96xbf16> to vector<8x32xbf16>
    %4 = vector.extract_strided_slice %1 {offsets = [0, 64], sizes = [8, 32], strides = [1, 1]} : vector<8x96xbf16> to vector<8x32xbf16>
    %5 = vector.extract_strided_slice %2 {offsets = [0, 0], sizes = [8, 8], strides = [1, 1]} : vector<8x32xbf16> to vector<8x8xbf16>
    %cst = arith.constant 3.535160e-01 : bf16
    %6 = vector.broadcast %cst : bf16 to vector<8x8xbf16>
    %7 = arith.mulf %5, %6 : vector<8x8xbf16>
    %8 = vector.extract_strided_slice %3 {offsets = [0, 0], sizes = [8, 8], strides = [1, 1]} : vector<8x32xbf16> to vector<8x8xbf16>
    %9 = vector.extract_strided_slice %4 {offsets = [0, 0], sizes = [8, 8], strides = [1, 1]} : vector<8x32xbf16> to vector<8x8xbf16>
    %cst_2 = arith.constant dense<0.000000e+00> : vector<8x8xf32>
    %10 = tpu.matmul %7, %8, %cst_2 {dimension_numbers = #tpu.dot_dimension_numbers<[1], [1], [0], [0], [0, 0, 1, 0], [], []>} : vector<8x8xbf16>, vector<8x8xbf16>, vector<8x8xf32> -> vector<8x8xf32>
    %cst_3 = arith.constant dense<0xFF800000> : vector<8xf32>
    %11 = vector.multi_reduction <maximumf>, %10, %cst_3 [1] : vector<8x8xf32> to vector<8xf32>
    %12 = vector.shape_cast %11 : vector<8xf32> to vector<8x1xf32>
    %13 = vector.broadcast %12 : vector<8x1xf32> to vector<8x8xf32>
    %14 = arith.subf %10, %13 : vector<8x8xf32>
    %15 = math.exp %14 : vector<8x8xf32>
    %cst_4 = arith.constant dense<0.000000e+00> : vector<8xf32>
    %16 = vector.multi_reduction <add>, %15, %cst_4 [1] : vector<8x8xf32> to vector<8xf32>
    %17 = vector.shape_cast %16 : vector<8xf32> to vector<8x1xf32>
    %18 = tpu.reciprocal %17 {approx = true} : vector<8x1xf32> -> vector<8x1xf32>
    %19 = vector.broadcast %18 : vector<8x1xf32> to vector<8x8xf32>
    %20 = arith.mulf %15, %19 : vector<8x8xf32>
    %21 = arith.truncf %20 : vector<8x8xf32> to vector<8x8xbf16>
    %cst_5 = arith.constant dense<0.000000e+00> : vector<8x8xf32>
    %22 = tpu.matmul %21, %9, %cst_5 {dimension_numbers = #tpu.dot_dimension_numbers<[1], [0], [0], [1], [0, 0, 1, 1], [], []>} : vector<8x8xbf16>, vector<8x8xbf16>, vector<8x8xf32> -> vector<8x8xf32>
    %23 = arith.truncf %22 : vector<8x8xf32> to vector<8x8xbf16>
    %c0_6 = arith.constant 0 : index
    %c0_7 = arith.constant 0 : index
    %c0_8 = arith.constant 0 : index
    %24 = vector.load %arg2[%c0_6, %c0_7, %c0_8] : memref<1x8x32xbf16, #tpu.memory_space<vmem>>, vector<1x8x8xbf16>
    %25 = vector.shape_cast %24 : vector<1x8x8xbf16> to vector<8x8xbf16>
    %26 = vector.shape_cast %23 : vector<8x8xbf16> to vector<1x8x8xbf16>
    tpu.vector_store %arg2[%c0_6, %c0_7, %c0_8], %26 {strides = array<i32>} : memref<1x8x32xbf16, #tpu.memory_space<vmem>>, vector<1x8x8xbf16>,
    %27 = vector.extract_strided_slice %2 {offsets = [0, 8], sizes = [8, 8], strides = [1, 1]} : vector<8x32xbf16> to vector<8x8xbf16>
    %cst_9 = arith.constant 3.535160e-01 : bf16
    %28 = vector.broadcast %cst_9 : bf16 to vector<8x8xbf16>
    %29 = arith.mulf %27, %28 : vector<8x8xbf16>
    %30 = vector.extract_strided_slice %3 {offsets = [0, 8], sizes = [8, 8], strides = [1, 1]} : vector<8x32xbf16> to vector<8x8xbf16>
    %31 = vector.extract_strided_slice %4 {offsets = [0, 8], sizes = [8, 8], strides = [1, 1]} : vector<8x32xbf16> to vector<8x8xbf16>
    %cst_10 = arith.constant dense<0.000000e+00> : vector<8x8xf32>
    %32 = tpu.matmul %29, %30, %cst_10 {dimension_numbers = #tpu.dot_dimension_numbers<[1], [1], [0], [0], [0, 0, 1, 0], [], []>} : vector<8x8xbf16>, vector<8x8xbf16>, vector<8x8xf32> -> vector<8x8xf32>
    %cst_11 = arith.constant dense<0xFF800000> : vector<8xf32>
    %33 = vector.multi_reduction <maximumf>, %32, %cst_11 [1] : vector<8x8xf32> to vector<8xf32>
    %34 = vector.shape_cast %33 : vector<8xf32> to vector<8x1xf32>
    %35 = vector.broadcast %34 : vector<8x1xf32> to vector<8x8xf32>
    %36 = arith.subf %32, %35 : vector<8x8xf32>
    %37 = math.exp %36 : vector<8x8xf32>
    %cst_12 = arith.constant dense<0.000000e+00> : vector<8xf32>
    %38 = vector.multi_reduction <add>, %37, %cst_12 [1] : vector<8x8xf32> to vector<8xf32>
    %39 = vector.shape_cast %38 : vector<8xf32> to vector<8x1xf32>
    %40 = tpu.reciprocal %39 {approx = true} : vector<8x1xf32> -> vector<8x1xf32>
    %41 = vector.broadcast %40 : vector<8x1xf32> to vector<8x8xf32>
    %42 = arith.mulf %37, %41 : vector<8x8xf32>
    %43 = arith.truncf %42 : vector<8x8xf32> to vector<8x8xbf16>
    %cst_13 = arith.constant dense<0.000000e+00> : vector<8x8xf32>
    %44 = tpu.matmul %43, %31, %cst_13 {dimension_numbers = #tpu.dot_dimension_numbers<[1], [0], [0], [1], [0, 0, 1, 1], [], []>} : vector<8x8xbf16>, vector<8x8xbf16>, vector<8x8xf32> -> vector<8x8xf32>
    %45 = arith.truncf %44 : vector<8x8xf32> to vector<8x8xbf16>
    %c0_14 = arith.constant 0 : index
    %c0_15 = arith.constant 0 : index
    %c8 = arith.constant 8 : index
    %46 = vector.load %arg2[%c0_14, %c0_15, %c8] : memref<1x8x32xbf16, #tpu.memory_space<vmem>>, vector<1x8x8xbf16>
    %47 = vector.shape_cast %46 : vector<1x8x8xbf16> to vector<8x8xbf16>
    %48 = vector.shape_cast %45 : vector<8x8xbf16> to vector<1x8x8xbf16>
    tpu.vector_store %arg2[%c0_14, %c0_15, %c8], %48 {strides = array<i32>} : memref<1x8x32xbf16, #tpu.memory_space<vmem>>, vector<1x8x8xbf16>,
    %49 = vector.extract_strided_slice %2 {offsets = [0, 16], sizes = [8, 8], strides = [1, 1]} : vector<8x32xbf16> to vector<8x8xbf16>
    %cst_16 = arith.constant 3.535160e-01 : bf16
    %50 = vector.broadcast %cst_16 : bf16 to vector<8x8xbf16>
    %51 = arith.mulf %49, %50 : vector<8x8xbf16>
    %52 = vector.extract_strided_slice %3 {offsets = [0, 16], sizes = [8, 8], strides = [1, 1]} : vector<8x32xbf16> to vector<8x8xbf16>
    %53 = vector.extract_strided_slice %4 {offsets = [0, 16], sizes = [8, 8], strides = [1, 1]} : vector<8x32xbf16> to vector<8x8xbf16>
    %cst_17 = arith.constant dense<0.000000e+00> : vector<8x8xf32>
    %54 = tpu.matmul %51, %52, %cst_17 {dimension_numbers = #tpu.dot_dimension_numbers<[1], [1], [0], [0], [0, 0, 1, 0], [], []>} : vector<8x8xbf16>, vector<8x8xbf16>, vector<8x8xf32> -> vector<8x8xf32>
    %cst_18 = arith.constant dense<0xFF800000> : vector<8xf32>
    %55 = vector.multi_reduction <maximumf>, %54, %cst_18 [1] : vector<8x8xf32> to vector<8xf32>
    %56 = vector.shape_cast %55 : vector<8xf32> to vector<8x1xf32>
    %57 = vector.broadcast %56 : vector<8x1xf32> to vector<8x8xf32>
    %58 = arith.subf %54, %57 : vector<8x8xf32>
    %59 = math.exp %58 : vector<8x8xf32>
    %cst_19 = arith.constant dense<0.000000e+00> : vector<8xf32>
    %60 = vector.multi_reduction <add>, %59, %cst_19 [1] : vector<8x8xf32> to vector<8xf32>
    %61 = vector.shape_cast %60 : vector<8xf32> to vector<8x1xf32>
    %62 = tpu.reciprocal %61 {approx = true} : vector<8x1xf32> -> vector<8x1xf32>
    %63 = vector.broadcast %62 : vector<8x1xf32> to vector<8x8xf32>
    %64 = arith.mulf %59, %63 : vector<8x8xf32>
    %65 = arith.truncf %64 : vector<8x8xf32> to vector<8x8xbf16>
    %cst_20 = arith.constant dense<0.000000e+00> : vector<8x8xf32>
    %66 = tpu.matmul %65, %53, %cst_20 {dimension_numbers = #tpu.dot_dimension_numbers<[1], [0], [0], [1], [0, 0, 1, 1], [], []>} : vector<8x8xbf16>, vector<8x8xbf16>, vector<8x8xf32> -> vector<8x8xf32>
    %67 = arith.truncf %66 : vector<8x8xf32> to vector<8x8xbf16>
    %c0_21 = arith.constant 0 : index
    %c0_22 = arith.constant 0 : index
    %c16 = arith.constant 16 : index
    %68 = vector.load %arg2[%c0_21, %c0_22, %c16] : memref<1x8x32xbf16, #tpu.memory_space<vmem>>, vector<1x8x8xbf16>
    %69 = vector.shape_cast %68 : vector<1x8x8xbf16> to vector<8x8xbf16>
    %70 = vector.shape_cast %67 : vector<8x8xbf16> to vector<1x8x8xbf16>
    tpu.vector_store %arg2[%c0_21, %c0_22, %c16], %70 {strides = array<i32>} : memref<1x8x32xbf16, #tpu.memory_space<vmem>>, vector<1x8x8xbf16>,
    %71 = vector.extract_strided_slice %2 {offsets = [0, 24], sizes = [8, 8], strides = [1, 1]} : vector<8x32xbf16> to vector<8x8xbf16>
    %cst_23 = arith.constant 3.535160e-01 : bf16
    %72 = vector.broadcast %cst_23 : bf16 to vector<8x8xbf16>
    %73 = arith.mulf %71, %72 : vector<8x8xbf16>
    %74 = vector.extract_strided_slice %3 {offsets = [0, 24], sizes = [8, 8], strides = [1, 1]} : vector<8x32xbf16> to vector<8x8xbf16>
    %75 = vector.extract_strided_slice %4 {offsets = [0, 24], sizes = [8, 8], strides = [1, 1]} : vector<8x32xbf16> to vector<8x8xbf16>
    %cst_24 = arith.constant dense<0.000000e+00> : vector<8x8xf32>
    %76 = tpu.matmul %73, %74, %cst_24 {dimension_numbers = #tpu.dot_dimension_numbers<[1], [1], [0], [0], [0, 0, 1, 0], [], []>} : vector<8x8xbf16>, vector<8x8xbf16>, vector<8x8xf32> -> vector<8x8xf32>
    %cst_25 = arith.constant dense<0xFF800000> : vector<8xf32>
    %77 = vector.multi_reduction <maximumf>, %76, %cst_25 [1] : vector<8x8xf32> to vector<8xf32>
    %78 = vector.shape_cast %77 : vector<8xf32> to vector<8x1xf32>
    %79 = vector.broadcast %78 : vector<8x1xf32> to vector<8x8xf32>
    %80 = arith.subf %76, %79 : vector<8x8xf32>
    %81 = math.exp %80 : vector<8x8xf32>
    %cst_26 = arith.constant dense<0.000000e+00> : vector<8xf32>
    %82 = vector.multi_reduction <add>, %81, %cst_26 [1] : vector<8x8xf32> to vector<8xf32>
    %83 = vector.shape_cast %82 : vector<8xf32> to vector<8x1xf32>
    %84 = tpu.reciprocal %83 {approx = true} : vector<8x1xf32> -> vector<8x1xf32>
    %85 = vector.broadcast %84 : vector<8x1xf32> to vector<8x8xf32>
    %86 = arith.mulf %81, %85 : vector<8x8xf32>
    %87 = arith.truncf %86 : vector<8x8xf32> to vector<8x8xbf16>
    %cst_27 = arith.constant dense<0.000000e+00> : vector<8x8xf32>
    %88 = tpu.matmul %87, %75, %cst_27 {dimension_numbers = #tpu.dot_dimension_numbers<[1], [0], [0], [1], [0, 0, 1, 1], [], []>} : vector<8x8xbf16>, vector<8x8xbf16>, vector<8x8xf32> -> vector<8x8xf32>
    %89 = arith.truncf %88 : vector<8x8xf32> to vector<8x8xbf16>
    %c0_28 = arith.constant 0 : index
    %c0_29 = arith.constant 0 : index
    %c24 = arith.constant 24 : index
    %90 = vector.load %arg2[%c0_28, %c0_29, %c24] : memref<1x8x32xbf16, #tpu.memory_space<vmem>>, vector<1x8x8xbf16>
    %91 = vector.shape_cast %90 : vector<1x8x8xbf16> to vector<8x8xbf16>
    %92 = vector.shape_cast %89 : vector<8x8xbf16> to vector<1x8x8xbf16>
    tpu.vector_store %arg2[%c0_28, %c0_29, %c24], %92 {strides = array<i32>} : memref<1x8x32xbf16, #tpu.memory_space<vmem>>, vector<1x8x8xbf16>,
    return
  }
  func.func @transform_0(%arg0: i32) -> (i32, i32, i32) {
    %c0_i32 = arith.constant 0 : i32
    %c0_i32_0 = arith.constant 0 : i32
    %c0_i32_1 = arith.constant 0 : i32
    return %arg0, %c0_i32, %c0_i32_0 : i32, i32, i32
  }
  func.func @transform_1(%arg0: i32) -> (i32, i32, i32) {
    %c0_i32 = arith.constant 0 : i32
    %c0_i32_0 = arith.constant 0 : i32
    %c0_i32_1 = arith.constant 0 : i32
    return %arg0, %c0_i32, %c0_i32_0 : i32, i32, i32
  }
}

module attributes {stable_mosaic.version = 11 : i64} {
  func.func @_linear_kernel(%arg0: i32, %arg1: i32, %arg2: i32, %arg3: memref<16x32xf32, #tpu.memory_space<vmem>>, %arg4: memref<32x96xbf16, #tpu.memory_space<vmem>>, %arg5: memref<1x96xf32, #tpu.memory_space<vmem>>, %arg6: memref<16x96xbf16, #tpu.memory_space<vmem>>, %arg7: memref<16x96xf32, #tpu.memory_space<vmem>>) attributes {dimension_semantics = [#tpu.dimension_semantics<parallel>, #tpu.dimension_semantics<parallel>, #tpu.dimension_semantics<arbitrary>], iteration_bounds = array<i64: 1, 1, 1>, scalar_prefetch = 0 : i64, scratch_operands = 1 : i64, tpu.core_type = #tpu.core_type<tc>, window_params = [{transform_indices = @transform_0, window_bounds = array<i64: 16, 32>}, {transform_indices = @transform_1, window_bounds = array<i64: 32, 96>}, {transform_indices = @transform_2, window_bounds = array<i64: 1, 96>}, {transform_indices = @transform_3, window_bounds = array<i64: 16, 96>}]} {
    %c0_i32 = arith.constant 0 : i32
    %0 = arith.cmpi eq, %arg2, %c0_i32 : i32
    %1 = arith.extui %0 : i1 to i32
    %c0_i32_0 = arith.constant 0 : i32
    %2 = arith.cmpi ne, %1, %c0_i32_0 : i32
    scf.if %2 {
      %cst_10 = arith.constant 0.000000e+00 : f32
      %13 = vector.broadcast %cst_10 : f32 to vector<16x96xf32>
      %c0_11 = arith.constant 0 : index
      %c0_12 = arith.constant 0 : index
      %14 = vector.load %arg7[%c0_11, %c0_12] : memref<16x96xf32, #tpu.memory_space<vmem>>, vector<16x96xf32>
      tpu.vector_store %arg7[%c0_11, %c0_12], %13 {strides = array<i32>} : memref<16x96xf32, #tpu.memory_space<vmem>>, vector<16x96xf32>,
    } else {
    }
    %c0 = arith.constant 0 : index
    %c0_1 = arith.constant 0 : index
    %3 = vector.load %arg7[%c0, %c0_1] : memref<16x96xf32, #tpu.memory_space<vmem>>, vector<16x96xf32>
    %c0_2 = arith.constant 0 : index
    %c0_3 = arith.constant 0 : index
    %4 = vector.load %arg3[%c0_2, %c0_3] : memref<16x32xf32, #tpu.memory_space<vmem>>, vector<16x32xf32>
    %5 = arith.truncf %4 : vector<16x32xf32> to vector<16x32xbf16>
    %c0_4 = arith.constant 0 : index
    %c0_5 = arith.constant 0 : index
    %6 = vector.load %arg4[%c0_4, %c0_5] : memref<32x96xbf16, #tpu.memory_space<vmem>>, vector<32x96xbf16>
    %cst = arith.constant dense<0.000000e+00> : vector<16x96xf32>
    %7 = tpu.matmul %5, %6, %cst {dimension_numbers = #tpu.dot_dimension_numbers<[1], [0], [0], [1], [0, 0, 1, 1], [], []>} : vector<16x32xbf16>, vector<32x96xbf16>, vector<16x96xf32> -> vector<16x96xf32>
    %8 = arith.addf %3, %7 : vector<16x96xf32>
    %c0_6 = arith.constant 0 : index
    %c0_7 = arith.constant 0 : index
    %9 = vector.load %arg7[%c0_6, %c0_7] : memref<16x96xf32, #tpu.memory_space<vmem>>, vector<16x96xf32>
    tpu.vector_store %arg7[%c0_6, %c0_7], %8 {strides = array<i32>} : memref<16x96xf32, #tpu.memory_space<vmem>>, vector<16x96xf32>,
    %c0_i32_8 = arith.constant 0 : i32
    %10 = arith.cmpi eq, %arg2, %c0_i32_8 : i32
    %11 = arith.extui %10 : i1 to i32
    %c0_i32_9 = arith.constant 0 : i32
    %12 = arith.cmpi ne, %11, %c0_i32_9 : i32
    scf.if %12 {
      %c0_10 = arith.constant 0 : index
      %c0_11 = arith.constant 0 : index
      %13 = vector.load %arg7[%c0_10, %c0_11] : memref<16x96xf32, #tpu.memory_space<vmem>>, vector<16x96xf32>
      %c0_12 = arith.constant 0 : index
      %c0_13 = arith.constant 0 : index
      %14 = vector.load %arg5[%c0_12, %c0_13] : memref<1x96xf32, #tpu.memory_space<vmem>>, vector<1x96xf32>
      %15 = vector.broadcast %14 : vector<1x96xf32> to vector<16x96xf32>
      %16 = arith.addf %13, %15 : vector<16x96xf32>
      %17 = arith.truncf %16 : vector<16x96xf32> to vector<16x96xbf16>
      %c0_14 = arith.constant 0 : index
      %c0_15 = arith.constant 0 : index
      %18 = vector.load %arg6[%c0_14, %c0_15] : memref<16x96xbf16, #tpu.memory_space<vmem>>, vector<16x96xbf16>
      tpu.vector_store %arg6[%c0_14, %c0_15], %17 {strides = array<i32>} : memref<16x96xbf16, #tpu.memory_space<vmem>>, vector<16x96xbf16>,
    } else {
    }
    return
  }
  func.func @transform_0(%arg0: i32, %arg1: i32, %arg2: i32) -> (i32, i32) {
    %c0_i32 = arith.constant 0 : i32
    return %arg0, %arg2 : i32, i32
  }
  func.func @transform_1(%arg0: i32, %arg1: i32, %arg2: i32) -> (i32, i32) {
    %c0_i32 = arith.constant 0 : i32
    return %arg2, %arg1 : i32, i32
  }
  func.func @transform_2(%arg0: i32, %arg1: i32, %arg2: i32) -> (i32, i32) {
    %c0_i32 = arith.constant 0 : i32
    %c0_i32_0 = arith.constant 0 : i32
    return %c0_i32, %arg1 : i32, i32
  }
  func.func @transform_3(%arg0: i32, %arg1: i32, %arg2: i32) -> (i32, i32) {
    %c0_i32 = arith.constant 0 : i32
    return %arg0, %arg1 : i32, i32
  }
}

module attributes {stable_mosaic.version = 11 : i64} {
  func.func @_ffn_ln_kernel(%arg0: i32, %arg1: memref<16x32xf32, #tpu.memory_space<vmem>>, %arg2: memref<32x64xbf16, #tpu.memory_space<vmem>>, %arg3: memref<1x64xf32, #tpu.memory_space<vmem>>, %arg4: memref<64x32xbf16, #tpu.memory_space<vmem>>, %arg5: memref<1x32xf32, #tpu.memory_space<vmem>>, %arg6: memref<1x32xf32, #tpu.memory_space<vmem>>, %arg7: memref<1x32xf32, #tpu.memory_space<vmem>>, %arg8: memref<16x32xf32, #tpu.memory_space<vmem>>) attributes {dimension_semantics = [#tpu.dimension_semantics<parallel>], iteration_bounds = array<i64: 1>, scalar_prefetch = 0 : i64, scratch_operands = 0 : i64, tpu.core_type = #tpu.core_type<tc>, window_params = [{transform_indices = @transform_0, window_bounds = array<i64: 16, 32>}, {pipeline_mode = #tpu.pipeline_mode<synchronous>, transform_indices = @transform_1, window_bounds = array<i64: 32, 64>}, {pipeline_mode = #tpu.pipeline_mode<synchronous>, transform_indices = @transform_2, window_bounds = array<i64: 1, 64>}, {pipeline_mode = #tpu.pipeline_mode<synchronous>, transform_indices = @transform_3, window_bounds = array<i64: 64, 32>}, {pipeline_mode = #tpu.pipeline_mode<synchronous>, transform_indices = @transform_4, window_bounds = array<i64: 1, 32>}, {pipeline_mode = #tpu.pipeline_mode<synchronous>, transform_indices = @transform_5, window_bounds = array<i64: 1, 32>}, {pipeline_mode = #tpu.pipeline_mode<synchronous>, transform_indices = @transform_6, window_bounds = array<i64: 1, 32>}, {transform_indices = @transform_7, window_bounds = array<i64: 16, 32>}]} {
    %c0 = arith.constant 0 : index
    %c0_0 = arith.constant 0 : index
    %0 = vector.load %arg1[%c0, %c0_0] : memref<16x32xf32, #tpu.memory_space<vmem>>, vector<16x32xf32>
    %1 = arith.truncf %0 : vector<16x32xf32> to vector<16x32xbf16>
    %c0_1 = arith.constant 0 : index
    %c0_2 = arith.constant 0 : index
    %2 = vector.load %arg2[%c0_1, %c0_2] : memref<32x64xbf16, #tpu.memory_space<vmem>>, vector<32x64xbf16>
    %cst = arith.constant dense<0.000000e+00> : vector<16x64xf32>
    %3 = tpu.matmul %1, %2, %cst {dimension_numbers = #tpu.dot_dimension_numbers<[1], [0], [0], [1], [0, 0, 1, 1], [], []>} : vector<16x32xbf16>, vector<32x64xbf16>, vector<16x64xf32> -> vector<16x64xf32>
    %c0_3 = arith.constant 0 : index
    %c0_4 = arith.constant 0 : index
    %4 = vector.load %arg3[%c0_3, %c0_4] : memref<1x64xf32, #tpu.memory_space<vmem>>, vector<1x64xf32>
    %5 = vector.broadcast %4 : vector<1x64xf32> to vector<16x64xf32>
    %6 = arith.addf %3, %5 : vector<16x64xf32>
    %cst_5 = arith.constant 0.000000e+00 : f32
    %7 = vector.broadcast %cst_5 : f32 to vector<16x64xf32>
    %8 = arith.maximumf %6, %7 : vector<16x64xf32>
    %9 = arith.truncf %8 : vector<16x64xf32> to vector<16x64xbf16>
    %c0_6 = arith.constant 0 : index
    %c0_7 = arith.constant 0 : index
    %10 = vector.load %arg4[%c0_6, %c0_7] : memref<64x32xbf16, #tpu.memory_space<vmem>>, vector<64x32xbf16>
    %cst_8 = arith.constant dense<0.000000e+00> : vector<16x32xf32>
    %11 = tpu.matmul %9, %10, %cst_8 {dimension_numbers = #tpu.dot_dimension_numbers<[1], [0], [0], [1], [0, 0, 1, 1], [], []>} : vector<16x64xbf16>, vector<64x32xbf16>, vector<16x32xf32> -> vector<16x32xf32>
    %c0_9 = arith.constant 0 : index
    %c0_10 = arith.constant 0 : index
    %12 = vector.load %arg5[%c0_9, %c0_10] : memref<1x32xf32, #tpu.memory_space<vmem>>, vector<1x32xf32>
    %13 = vector.broadcast %12 : vector<1x32xf32> to vector<16x32xf32>
    %14 = arith.addf %11, %13 : vector<16x32xf32>
    %15 = arith.addf %0, %14 : vector<16x32xf32>
    %c0_11 = arith.constant 0 : index
    %c0_12 = arith.constant 0 : index
    %16 = vector.load %arg6[%c0_11, %c0_12] : memref<1x32xf32, #tpu.memory_space<vmem>>, vector<1x32xf32>
    %c0_13 = arith.constant 0 : index
    %c0_14 = arith.constant 0 : index
    %17 = vector.load %arg7[%c0_13, %c0_14] : memref<1x32xf32, #tpu.memory_space<vmem>>, vector<1x32xf32>
    %cst_15 = arith.constant dense<0.000000e+00> : vector<16xf32>
    %18 = vector.multi_reduction <add>, %15, %cst_15 [1] : vector<16x32xf32> to vector<16xf32>
    %19 = vector.shape_cast %18 : vector<16xf32> to vector<16x1xf32>
    %cst_16 = arith.constant 3.200000e+01 : f32
    %20 = vector.broadcast %cst_16 : f32 to vector<16x1xf32>
    %21 = arith.divf %19, %20 : vector<16x1xf32>
    %22 = vector.broadcast %21 : vector<16x1xf32> to vector<16x32xf32>
    %23 = arith.subf %15, %22 : vector<16x32xf32>
    %24 = arith.mulf %23, %23 : vector<16x32xf32>
    %cst_17 = arith.constant dense<0.000000e+00> : vector<16xf32>
    %25 = vector.multi_reduction <add>, %24, %cst_17 [1] : vector<16x32xf32> to vector<16xf32>
    %26 = vector.shape_cast %25 : vector<16xf32> to vector<16x1xf32>
    %cst_18 = arith.constant 3.200000e+01 : f32
    %27 = vector.broadcast %cst_18 : f32 to vector<16x1xf32>
    %28 = arith.divf %26, %27 : vector<16x1xf32>
    %cst_19 = arith.constant 9.99999974E-6 : f32
    %29 = vector.broadcast %cst_19 : f32 to vector<16x1xf32>
    %30 = arith.addf %28, %29 : vector<16x1xf32>
    %31 = math.rsqrt %30 : vector<16x1xf32>
    %32 = vector.broadcast %31 : vector<16x1xf32> to vector<16x32xf32>
    %33 = arith.mulf %23, %32 : vector<16x32xf32>
    %34 = vector.broadcast %16 : vector<1x32xf32> to vector<16x32xf32>
    %35 = arith.mulf %33, %34 : vector<16x32xf32>
    %36 = vector.broadcast %17 : vector<1x32xf32> to vector<16x32xf32>
    %37 = arith.addf %35, %36 : vector<16x32xf32>
    %c0_20 = arith.constant 0 : index
    %c0_21 = arith.constant 0 : index
    %38 = vector.load %arg8[%c0_20, %c0_21] : memref<16x32xf32, #tpu.memory_space<vmem>>, vector<16x32xf32>
    tpu.vector_store %arg8[%c0_20, %c0_21], %37 {strides = array<i32>} : memref<16x32xf32, #tpu.memory_space<vmem>>, vector<16x32xf32>,
    return
  }
  func.func @transform_0(%arg0: i32) -> (i32, i32) {
    %c0_i32 = arith.constant 0 : i32
    %c0_i32_0 = arith.constant 0 : i32
    return %arg0, %c0_i32 : i32, i32
  }
  func.func @transform_1(%arg0: i32) -> (i32, i32) {
    %c0_i32 = arith.constant 0 : i32
    %c0_i32_0 = arith.constant 0 : i32
    %c0_i32_1 = arith.constant 0 : i32
    return %c0_i32, %c0_i32_0 : i32, i32
  }
  func.func @transform_2(%arg0: i32) -> (i32, i32) {
    %c0_i32 = arith.constant 0 : i32
    %c0_i32_0 = arith.constant 0 : i32
    %c0_i32_1 = arith.constant 0 : i32
    return %c0_i32, %c0_i32_0 : i32, i32
  }
  func.func @transform_3(%arg0: i32) -> (i32, i32) {
    %c0_i32 = arith.constant 0 : i32
    %c0_i32_0 = arith.constant 0 : i32
    %c0_i32_1 = arith.constant 0 : i32
    return %c0_i32, %c0_i32_0 : i32, i32
  }
  func.func @transform_4(%arg0: i32) -> (i32, i32) {
    %c0_i32 = arith.constant 0 : i32
    %c0_i32_0 = arith.constant 0 : i32
    %c0_i32_1 = arith.constant 0 : i32
    return %c0_i32, %c0_i32_0 : i32, i32
  }
  func.func @transform_5(%arg0: i32) -> (i32, i32) {
    %c0_i32 = arith.constant 0 : i32
    %c0_i32_0 = arith.constant 0 : i32
    %c0_i32_1 = arith.constant 0 : i32
    return %c0_i32, %c0_i32_0 : i32, i32
  }
  func.func @transform_6(%arg0: i32) -> (i32, i32) {
    %c0_i32 = arith.constant 0 : i32
    %c0_i32_0 = arith.constant 0 : i32
    %c0_i32_1 = arith.constant 0 : i32
    return %c0_i32, %c0_i32_0 : i32, i32
  }
  func.func @transform_7(%arg0: i32) -> (i32, i32) {
    %c0_i32 = arith.constant 0 : i32
    %c0_i32_0 = arith.constant 0 : i32
    return %arg0, %c0_i32 : i32, i32
  }
}

module attributes {stable_mosaic.version = 11 : i64} {
  func.func @_ln_kernel(%arg0: i32, %arg1: memref<16x32xf32, #tpu.memory_space<vmem>>, %arg2: memref<1x32xf32, #tpu.memory_space<vmem>>, %arg3: memref<1x32xf32, #tpu.memory_space<vmem>>, %arg4: memref<16x32xf32, #tpu.memory_space<vmem>>) attributes {dimension_semantics = [#tpu.dimension_semantics<parallel>], iteration_bounds = array<i64: 1>, scalar_prefetch = 0 : i64, scratch_operands = 0 : i64, tpu.core_type = #tpu.core_type<tc>, window_params = [{transform_indices = @transform_0, window_bounds = array<i64: 16, 32>}, {pipeline_mode = #tpu.pipeline_mode<synchronous>, transform_indices = @transform_1, window_bounds = array<i64: 1, 32>}, {pipeline_mode = #tpu.pipeline_mode<synchronous>, transform_indices = @transform_2, window_bounds = array<i64: 1, 32>}, {transform_indices = @transform_3, window_bounds = array<i64: 16, 32>}]} {
    %c0 = arith.constant 0 : index
    %c0_0 = arith.constant 0 : index
    %0 = vector.load %arg1[%c0, %c0_0] : memref<16x32xf32, #tpu.memory_space<vmem>>, vector<16x32xf32>
    %c0_1 = arith.constant 0 : index
    %c0_2 = arith.constant 0 : index
    %1 = vector.load %arg2[%c0_1, %c0_2] : memref<1x32xf32, #tpu.memory_space<vmem>>, vector<1x32xf32>
    %c0_3 = arith.constant 0 : index
    %c0_4 = arith.constant 0 : index
    %2 = vector.load %arg3[%c0_3, %c0_4] : memref<1x32xf32, #tpu.memory_space<vmem>>, vector<1x32xf32>
    %cst = arith.constant dense<0.000000e+00> : vector<16xf32>
    %3 = vector.multi_reduction <add>, %0, %cst [1] : vector<16x32xf32> to vector<16xf32>
    %4 = vector.shape_cast %3 : vector<16xf32> to vector<16x1xf32>
    %cst_5 = arith.constant 3.200000e+01 : f32
    %5 = vector.broadcast %cst_5 : f32 to vector<16x1xf32>
    %6 = arith.divf %4, %5 : vector<16x1xf32>
    %7 = vector.broadcast %6 : vector<16x1xf32> to vector<16x32xf32>
    %8 = arith.subf %0, %7 : vector<16x32xf32>
    %9 = arith.mulf %8, %8 : vector<16x32xf32>
    %cst_6 = arith.constant dense<0.000000e+00> : vector<16xf32>
    %10 = vector.multi_reduction <add>, %9, %cst_6 [1] : vector<16x32xf32> to vector<16xf32>
    %11 = vector.shape_cast %10 : vector<16xf32> to vector<16x1xf32>
    %cst_7 = arith.constant 3.200000e+01 : f32
    %12 = vector.broadcast %cst_7 : f32 to vector<16x1xf32>
    %13 = arith.divf %11, %12 : vector<16x1xf32>
    %cst_8 = arith.constant 9.99999974E-6 : f32
    %14 = vector.broadcast %cst_8 : f32 to vector<16x1xf32>
    %15 = arith.addf %13, %14 : vector<16x1xf32>
    %16 = math.rsqrt %15 : vector<16x1xf32>
    %17 = vector.broadcast %16 : vector<16x1xf32> to vector<16x32xf32>
    %18 = arith.mulf %8, %17 : vector<16x32xf32>
    %19 = vector.broadcast %1 : vector<1x32xf32> to vector<16x32xf32>
    %20 = arith.mulf %18, %19 : vector<16x32xf32>
    %21 = vector.broadcast %2 : vector<1x32xf32> to vector<16x32xf32>
    %22 = arith.addf %20, %21 : vector<16x32xf32>
    %c0_9 = arith.constant 0 : index
    %c0_10 = arith.constant 0 : index
    %23 = vector.load %arg4[%c0_9, %c0_10] : memref<16x32xf32, #tpu.memory_space<vmem>>, vector<16x32xf32>
    tpu.vector_store %arg4[%c0_9, %c0_10], %22 {strides = array<i32>} : memref<16x32xf32, #tpu.memory_space<vmem>>, vector<16x32xf32>,
    return
  }
  func.func @transform_0(%arg0: i32) -> (i32, i32) {
    %c0_i32 = arith.constant 0 : i32
    %c0_i32_0 = arith.constant 0 : i32
    return %arg0, %c0_i32 : i32, i32
  }
  func.func @transform_1(%arg0: i32) -> (i32, i32) {
    %c0_i32 = arith.constant 0 : i32
    %c0_i32_0 = arith.constant 0 : i32
    %c0_i32_1 = arith.constant 0 : i32
    return %c0_i32, %c0_i32_0 : i32, i32
  }
  func.func @transform_2(%arg0: i32) -> (i32, i32) {
    %c0_i32 = arith.constant 0 : i32
    %c0_i32_0 = arith.constant 0 : i32
    %c0_i32_1 = arith.constant 0 : i32
    return %c0_i32, %c0_i32_0 : i32, i32
  }
  func.func @transform_3(%arg0: i32) -> (i32, i32) {
    %c0_i32 = arith.constant 0 : i32
    %c0_i32_0 = arith.constant 0 : i32
    return %arg0, %c0_i32 : i32, i32
  }
}

module attributes {stable_mosaic.version = 11 : i64} {
  func.func @_linear_kernel(%arg0: i32, %arg1: i32, %arg2: i32, %arg3: memref<16x32xf32, #tpu.memory_space<vmem>>, %arg4: memref<32x64xbf16, #tpu.memory_space<vmem>>, %arg5: memref<1x64xf32, #tpu.memory_space<vmem>>, %arg6: memref<16x64xbf16, #tpu.memory_space<vmem>>, %arg7: memref<16x64xf32, #tpu.memory_space<vmem>>) attributes {dimension_semantics = [#tpu.dimension_semantics<parallel>, #tpu.dimension_semantics<parallel>, #tpu.dimension_semantics<arbitrary>], iteration_bounds = array<i64: 1, 1, 1>, scalar_prefetch = 0 : i64, scratch_operands = 1 : i64, tpu.core_type = #tpu.core_type<tc>, window_params = [{transform_indices = @transform_0, window_bounds = array<i64: 16, 32>}, {transform_indices = @transform_1, window_bounds = array<i64: 32, 64>}, {transform_indices = @transform_2, window_bounds = array<i64: 1, 64>}, {transform_indices = @transform_3, window_bounds = array<i64: 16, 64>}]} {
    %c0_i32 = arith.constant 0 : i32
    %0 = arith.cmpi eq, %arg2, %c0_i32 : i32
    %1 = arith.extui %0 : i1 to i32
    %c0_i32_0 = arith.constant 0 : i32
    %2 = arith.cmpi ne, %1, %c0_i32_0 : i32
    scf.if %2 {
      %cst_10 = arith.constant 0.000000e+00 : f32
      %13 = vector.broadcast %cst_10 : f32 to vector<16x64xf32>
      %c0_11 = arith.constant 0 : index
      %c0_12 = arith.constant 0 : index
      %14 = vector.load %arg7[%c0_11, %c0_12] : memref<16x64xf32, #tpu.memory_space<vmem>>, vector<16x64xf32>
      tpu.vector_store %arg7[%c0_11, %c0_12], %13 {strides = array<i32>} : memref<16x64xf32, #tpu.memory_space<vmem>>, vector<16x64xf32>,
    } else {
    }
    %c0 = arith.constant 0 : index
    %c0_1 = arith.constant 0 : index
    %3 = vector.load %arg7[%c0, %c0_1] : memref<16x64xf32, #tpu.memory_space<vmem>>, vector<16x64xf32>
    %c0_2 = arith.constant 0 : index
    %c0_3 = arith.constant 0 : index
    %4 = vector.load %arg3[%c0_2, %c0_3] : memref<16x32xf32, #tpu.memory_space<vmem>>, vector<16x32xf32>
    %5 = arith.truncf %4 : vector<16x32xf32> to vector<16x32xbf16>
    %c0_4 = arith.constant 0 : index
    %c0_5 = arith.constant 0 : index
    %6 = vector.load %arg4[%c0_4, %c0_5] : memref<32x64xbf16, #tpu.memory_space<vmem>>, vector<32x64xbf16>
    %cst = arith.constant dense<0.000000e+00> : vector<16x64xf32>
    %7 = tpu.matmul %5, %6, %cst {dimension_numbers = #tpu.dot_dimension_numbers<[1], [0], [0], [1], [0, 0, 1, 1], [], []>} : vector<16x32xbf16>, vector<32x64xbf16>, vector<16x64xf32> -> vector<16x64xf32>
    %8 = arith.addf %3, %7 : vector<16x64xf32>
    %c0_6 = arith.constant 0 : index
    %c0_7 = arith.constant 0 : index
    %9 = vector.load %arg7[%c0_6, %c0_7] : memref<16x64xf32, #tpu.memory_space<vmem>>, vector<16x64xf32>
    tpu.vector_store %arg7[%c0_6, %c0_7], %8 {strides = array<i32>} : memref<16x64xf32, #tpu.memory_space<vmem>>, vector<16x64xf32>,
    %c0_i32_8 = arith.constant 0 : i32
    %10 = arith.cmpi eq, %arg2, %c0_i32_8 : i32
    %11 = arith.extui %10 : i1 to i32
    %c0_i32_9 = arith.constant 0 : i32
    %12 = arith.cmpi ne, %11, %c0_i32_9 : i32
    scf.if %12 {
      %c0_10 = arith.constant 0 : index
      %c0_11 = arith.constant 0 : index
      %13 = vector.load %arg7[%c0_10, %c0_11] : memref<16x64xf32, #tpu.memory_space<vmem>>, vector<16x64xf32>
      %c0_12 = arith.constant 0 : index
      %c0_13 = arith.constant 0 : index
      %14 = vector.load %arg5[%c0_12, %c0_13] : memref<1x64xf32, #tpu.memory_space<vmem>>, vector<1x64xf32>
      %15 = vector.broadcast %14 : vector<1x64xf32> to vector<16x64xf32>
      %16 = arith.addf %13, %15 : vector<16x64xf32>
      %17 = arith.truncf %16 : vector<16x64xf32> to vector<16x64xbf16>
      %c0_14 = arith.constant 0 : index
      %c0_15 = arith.constant 0 : index
      %18 = vector.load %arg6[%c0_14, %c0_15] : memref<16x64xbf16, #tpu.memory_space<vmem>>, vector<16x64xbf16>
      tpu.vector_store %arg6[%c0_14, %c0_15], %17 {strides = array<i32>} : memref<16x64xbf16, #tpu.memory_space<vmem>>, vector<16x64xbf16>,
    } else {
    }
    return
  }
  func.func @transform_0(%arg0: i32, %arg1: i32, %arg2: i32) -> (i32, i32) {
    %c0_i32 = arith.constant 0 : i32
    return %arg0, %arg2 : i32, i32
  }
  func.func @transform_1(%arg0: i32, %arg1: i32, %arg2: i32) -> (i32, i32) {
    %c0_i32 = arith.constant 0 : i32
    return %arg2, %arg1 : i32, i32
  }
  func.func @transform_2(%arg0: i32, %arg1: i32, %arg2: i32) -> (i32, i32) {
    %c0_i32 = arith.constant 0 : i32
    %c0_i32_0 = arith.constant 0 : i32
    return %c0_i32, %arg1 : i32, i32
  }
  func.func @transform_3(%arg0: i32, %arg1: i32, %arg2: i32) -> (i32, i32) {
    %c0_i32 = arith.constant 0 : i32
    return %arg0, %arg1 : i32, i32
  }
}

module attributes {stable_mosaic.version = 11 : i64} {
  func.func @_linear_kernel(%arg0: i32, %arg1: i32, %arg2: i32, %arg3: memref<16x32xf32, #tpu.memory_space<vmem>>, %arg4: memref<32x32xbf16, #tpu.memory_space<vmem>>, %arg5: memref<1x32xf32, #tpu.memory_space<vmem>>, %arg6: memref<16x32xbf16, #tpu.memory_space<vmem>>, %arg7: memref<16x32xf32, #tpu.memory_space<vmem>>) attributes {dimension_semantics = [#tpu.dimension_semantics<parallel>, #tpu.dimension_semantics<parallel>, #tpu.dimension_semantics<arbitrary>], iteration_bounds = array<i64: 1, 1, 1>, scalar_prefetch = 0 : i64, scratch_operands = 1 : i64, tpu.core_type = #tpu.core_type<tc>, window_params = [{transform_indices = @transform_0, window_bounds = array<i64: 16, 32>}, {transform_indices = @transform_1, window_bounds = array<i64: 32, 32>}, {transform_indices = @transform_2, window_bounds = array<i64: 1, 32>}, {transform_indices = @transform_3, window_bounds = array<i64: 16, 32>}]} {
    %c0_i32 = arith.constant 0 : i32
    %0 = arith.cmpi eq, %arg2, %c0_i32 : i32
    %1 = arith.extui %0 : i1 to i32
    %c0_i32_0 = arith.constant 0 : i32
    %2 = arith.cmpi ne, %1, %c0_i32_0 : i32
    scf.if %2 {
      %cst_10 = arith.constant 0.000000e+00 : f32
      %13 = vector.broadcast %cst_10 : f32 to vector<16x32xf32>
      %c0_11 = arith.constant 0 : index
      %c0_12 = arith.constant 0 : index
      %14 = vector.load %arg7[%c0_11, %c0_12] : memref<16x32xf32, #tpu.memory_space<vmem>>, vector<16x32xf32>
      tpu.vector_store %arg7[%c0_11, %c0_12], %13 {strides = array<i32>} : memref<16x32xf32, #tpu.memory_space<vmem>>, vector<16x32xf32>,
    } else {
    }
    %c0 = arith.constant 0 : index
    %c0_1 = arith.constant 0 : index
    %3 = vector.load %arg7[%c0, %c0_1] : memref<16x32xf32, #tpu.memory_space<vmem>>, vector<16x32xf32>
    %c0_2 = arith.constant 0 : index
    %c0_3 = arith.constant 0 : index
    %4 = vector.load %arg3[%c0_2, %c0_3] : memref<16x32xf32, #tpu.memory_space<vmem>>, vector<16x32xf32>
    %5 = arith.truncf %4 : vector<16x32xf32> to vector<16x32xbf16>
    %c0_4 = arith.constant 0 : index
    %c0_5 = arith.constant 0 : index
    %6 = vector.load %arg4[%c0_4, %c0_5] : memref<32x32xbf16, #tpu.memory_space<vmem>>, vector<32x32xbf16>
    %cst = arith.constant dense<0.000000e+00> : vector<16x32xf32>
    %7 = tpu.matmul %5, %6, %cst {dimension_numbers = #tpu.dot_dimension_numbers<[1], [0], [0], [1], [0, 0, 1, 1], [], []>} : vector<16x32xbf16>, vector<32x32xbf16>, vector<16x32xf32> -> vector<16x32xf32>
    %8 = arith.addf %3, %7 : vector<16x32xf32>
    %c0_6 = arith.constant 0 : index
    %c0_7 = arith.constant 0 : index
    %9 = vector.load %arg7[%c0_6, %c0_7] : memref<16x32xf32, #tpu.memory_space<vmem>>, vector<16x32xf32>
    tpu.vector_store %arg7[%c0_6, %c0_7], %8 {strides = array<i32>} : memref<16x32xf32, #tpu.memory_space<vmem>>, vector<16x32xf32>,
    %c0_i32_8 = arith.constant 0 : i32
    %10 = arith.cmpi eq, %arg2, %c0_i32_8 : i32
    %11 = arith.extui %10 : i1 to i32
    %c0_i32_9 = arith.constant 0 : i32
    %12 = arith.cmpi ne, %11, %c0_i32_9 : i32
    scf.if %12 {
      %c0_10 = arith.constant 0 : index
      %c0_11 = arith.constant 0 : index
      %13 = vector.load %arg7[%c0_10, %c0_11] : memref<16x32xf32, #tpu.memory_space<vmem>>, vector<16x32xf32>
      %c0_12 = arith.constant 0 : index
      %c0_13 = arith.constant 0 : index
      %14 = vector.load %arg5[%c0_12, %c0_13] : memref<1x32xf32, #tpu.memory_space<vmem>>, vector<1x32xf32>
      %15 = vector.broadcast %14 : vector<1x32xf32> to vector<16x32xf32>
      %16 = arith.addf %13, %15 : vector<16x32xf32>
      %17 = arith.truncf %16 : vector<16x32xf32> to vector<16x32xbf16>
      %c0_14 = arith.constant 0 : index
      %c0_15 = arith.constant 0 : index
      %18 = vector.load %arg6[%c0_14, %c0_15] : memref<16x32xbf16, #tpu.memory_space<vmem>>, vector<16x32xbf16>
      tpu.vector_store %arg6[%c0_14, %c0_15], %17 {strides = array<i32>} : memref<16x32xbf16, #tpu.memory_space<vmem>>, vector<16x32xbf16>,
    } else {
    }
    return
  }
  func.func @transform_0(%arg0: i32, %arg1: i32, %arg2: i32) -> (i32, i32) {
    %c0_i32 = arith.constant 0 : i32
    return %arg0, %arg2 : i32, i32
  }
  func.func @transform_1(%arg0: i32, %arg1: i32, %arg2: i32) -> (i32, i32) {
    %c0_i32 = arith.constant 0 : i32
    return %arg2, %arg1 : i32, i32
  }
  func.func @transform_2(%arg0: i32, %arg1: i32, %arg2: i32) -> (i32, i32) {
    %c0_i32 = arith.constant 0 : i32
    %c0_i32_0 = arith.constant 0 : i32
    return %c0_i32, %arg1 : i32, i32
  }
  func.func @transform_3(%arg0: i32, %arg1: i32, %arg2: i32) -> (i32, i32) {
    %c0_i32 = arith.constant 0 : i32
    return %arg0, %arg1 : i32, i32
  }
}

module attributes {stable_mosaic.version = 11 : i64} {
  func.func @_linear_kernel(%arg0: i32, %arg1: i32, %arg2: i32, %arg3: memref<16x32xf32, #tpu.memory_space<vmem>>, %arg4: memref<32x56xbf16, #tpu.memory_space<vmem>>, %arg5: memref<1x56xf32, #tpu.memory_space<vmem>>, %arg6: memref<16x56xf32, #tpu.memory_space<vmem>>, %arg7: memref<16x56xf32, #tpu.memory_space<vmem>>) attributes {dimension_semantics = [#tpu.dimension_semantics<parallel>, #tpu.dimension_semantics<parallel>, #tpu.dimension_semantics<arbitrary>], iteration_bounds = array<i64: 1, 1, 1>, scalar_prefetch = 0 : i64, scratch_operands = 1 : i64, tpu.core_type = #tpu.core_type<tc>, window_params = [{transform_indices = @transform_0, window_bounds = array<i64: 16, 32>}, {transform_indices = @transform_1, window_bounds = array<i64: 32, 56>}, {transform_indices = @transform_2, window_bounds = array<i64: 1, 56>}, {transform_indices = @transform_3, window_bounds = array<i64: 16, 56>}]} {
    %c0_i32 = arith.constant 0 : i32
    %0 = arith.cmpi eq, %arg2, %c0_i32 : i32
    %1 = arith.extui %0 : i1 to i32
    %c0_i32_0 = arith.constant 0 : i32
    %2 = arith.cmpi ne, %1, %c0_i32_0 : i32
    scf.if %2 {
      %cst_10 = arith.constant 0.000000e+00 : f32
      %13 = vector.broadcast %cst_10 : f32 to vector<16x56xf32>
      %c0_11 = arith.constant 0 : index
      %c0_12 = arith.constant 0 : index
      %14 = vector.load %arg7[%c0_11, %c0_12] : memref<16x56xf32, #tpu.memory_space<vmem>>, vector<16x56xf32>
      tpu.vector_store %arg7[%c0_11, %c0_12], %13 {strides = array<i32>} : memref<16x56xf32, #tpu.memory_space<vmem>>, vector<16x56xf32>,
    } else {
    }
    %c0 = arith.constant 0 : index
    %c0_1 = arith.constant 0 : index
    %3 = vector.load %arg7[%c0, %c0_1] : memref<16x56xf32, #tpu.memory_space<vmem>>, vector<16x56xf32>
    %c0_2 = arith.constant 0 : index
    %c0_3 = arith.constant 0 : index
    %4 = vector.load %arg3[%c0_2, %c0_3] : memref<16x32xf32, #tpu.memory_space<vmem>>, vector<16x32xf32>
    %5 = arith.truncf %4 : vector<16x32xf32> to vector<16x32xbf16>
    %c0_4 = arith.constant 0 : index
    %c0_5 = arith.constant 0 : index
    %6 = vector.load %arg4[%c0_4, %c0_5] : memref<32x56xbf16, #tpu.memory_space<vmem>>, vector<32x56xbf16>
    %cst = arith.constant dense<0.000000e+00> : vector<16x56xf32>
    %7 = tpu.matmul %5, %6, %cst {dimension_numbers = #tpu.dot_dimension_numbers<[1], [0], [0], [1], [0, 0, 1, 1], [], []>} : vector<16x32xbf16>, vector<32x56xbf16>, vector<16x56xf32> -> vector<16x56xf32>
    %8 = arith.addf %3, %7 : vector<16x56xf32>
    %c0_6 = arith.constant 0 : index
    %c0_7 = arith.constant 0 : index
    %9 = vector.load %arg7[%c0_6, %c0_7] : memref<16x56xf32, #tpu.memory_space<vmem>>, vector<16x56xf32>
    tpu.vector_store %arg7[%c0_6, %c0_7], %8 {strides = array<i32>} : memref<16x56xf32, #tpu.memory_space<vmem>>, vector<16x56xf32>,
    %c0_i32_8 = arith.constant 0 : i32
    %10 = arith.cmpi eq, %arg2, %c0_i32_8 : i32
    %11 = arith.extui %10 : i1 to i32
    %c0_i32_9 = arith.constant 0 : i32
    %12 = arith.cmpi ne, %11, %c0_i32_9 : i32
    scf.if %12 {
      %c0_10 = arith.constant 0 : index
      %c0_11 = arith.constant 0 : index
      %13 = vector.load %arg7[%c0_10, %c0_11] : memref<16x56xf32, #tpu.memory_space<vmem>>, vector<16x56xf32>
      %c0_12 = arith.constant 0 : index
      %c0_13 = arith.constant 0 : index
      %14 = vector.load %arg5[%c0_12, %c0_13] : memref<1x56xf32, #tpu.memory_space<vmem>>, vector<1x56xf32>
      %15 = vector.broadcast %14 : vector<1x56xf32> to vector<16x56xf32>
      %16 = arith.addf %13, %15 : vector<16x56xf32>
      %c0_14 = arith.constant 0 : index
      %c0_15 = arith.constant 0 : index
      %17 = vector.load %arg6[%c0_14, %c0_15] : memref<16x56xf32, #tpu.memory_space<vmem>>, vector<16x56xf32>
      tpu.vector_store %arg6[%c0_14, %c0_15], %16 {strides = array<i32>} : memref<16x56xf32, #tpu.memory_space<vmem>>, vector<16x56xf32>,
    } else {
    }
    return
  }
  func.func @transform_0(%arg0: i32, %arg1: i32, %arg2: i32) -> (i32, i32) {
    %c0_i32 = arith.constant 0 : i32
    return %arg0, %arg2 : i32, i32
  }
  func.func @transform_1(%arg0: i32, %arg1: i32, %arg2: i32) -> (i32, i32) {
    %c0_i32 = arith.constant 0 : i32
    return %arg2, %arg1 : i32, i32
  }
  func.func @transform_2(%arg0: i32, %arg1: i32, %arg2: i32) -> (i32, i32) {
    %c0_i32 = arith.constant 0 : i32
    %c0_i32_0 = arith.constant 0 : i32
    return %c0_i32, %arg1 : i32, i32
  }
  func.func @transform_3(%arg0: i32, %arg1: i32, %arg2: i32) -> (i32, i32) {
    %c0_i32 = arith.constant 0 : i32
    return %arg0, %arg1 : i32, i32
  }
}

module attributes {stable_mosaic.version = 11 : i64} {
  func.func @_cross_mha_kernel(%arg0: i32, %arg1: memref<1x8x32xbf16, #tpu.memory_space<vmem>>, %arg2: memref<1x8x64xbf16, #tpu.memory_space<vmem>>, %arg3: memref<1x8x32xbf16, #tpu.memory_space<vmem>>) attributes {dimension_semantics = [#tpu.dimension_semantics<parallel>], iteration_bounds = array<i64: 2>, scalar_prefetch = 0 : i64, scratch_operands = 0 : i64, tpu.core_type = #tpu.core_type<tc>, window_params = [{transform_indices = @transform_0, window_bounds = array<i64: 1, 8, 32>}, {transform_indices = @transform_1, window_bounds = array<i64: 1, 8, 64>}, {transform_indices = @transform_2, window_bounds = array<i64: 1, 8, 32>}]} {
    %c0 = arith.constant 0 : index
    %c0_0 = arith.constant 0 : index
    %c0_1 = arith.constant 0 : index
    %0 = vector.load %arg1[%c0, %c0_0, %c0_1] : memref<1x8x32xbf16, #tpu.memory_space<vmem>>, vector<1x8x32xbf16>
    %1 = vector.shape_cast %0 : vector<1x8x32xbf16> to vector<8x32xbf16>
    %c0_2 = arith.constant 0 : index
    %c0_3 = arith.constant 0 : index
    %c0_4 = arith.constant 0 : index
    %2 = vector.load %arg2[%c0_2, %c0_3, %c0_4] : memref<1x8x64xbf16, #tpu.memory_space<vmem>>, vector<1x8x64xbf16>
    %3 = vector.shape_cast %2 : vector<1x8x64xbf16> to vector<8x64xbf16>
    %4 = vector.extract_strided_slice %3 {offsets = [0, 0], sizes = [8, 32], strides = [1, 1]} : vector<8x64xbf16> to vector<8x32xbf16>
    %5 = vector.extract_strided_slice %3 {offsets = [0, 32], sizes = [8, 32], strides = [1, 1]} : vector<8x64xbf16> to vector<8x32xbf16>
    %6 = vector.extract_strided_slice %1 {offsets = [0, 0], sizes = [8, 8], strides = [1, 1]} : vector<8x32xbf16> to vector<8x8xbf16>
    %cst = arith.constant 3.535160e-01 : bf16
    %7 = vector.broadcast %cst : bf16 to vector<8x8xbf16>
    %8 = arith.mulf %6, %7 : vector<8x8xbf16>
    %9 = vector.extract_strided_slice %4 {offsets = [0, 0], sizes = [8, 8], strides = [1, 1]} : vector<8x32xbf16> to vector<8x8xbf16>
    %10 = vector.extract_strided_slice %5 {offsets = [0, 0], sizes = [8, 8], strides = [1, 1]} : vector<8x32xbf16> to vector<8x8xbf16>
    %cst_5 = arith.constant dense<0.000000e+00> : vector<8x8xf32>
    %11 = tpu.matmul %8, %9, %cst_5 {dimension_numbers = #tpu.dot_dimension_numbers<[1], [1], [0], [0], [0, 0, 1, 0], [], []>} : vector<8x8xbf16>, vector<8x8xbf16>, vector<8x8xf32> -> vector<8x8xf32>
    %cst_6 = arith.constant dense<0xFF800000> : vector<8xf32>
    %12 = vector.multi_reduction <maximumf>, %11, %cst_6 [1] : vector<8x8xf32> to vector<8xf32>
    %13 = vector.shape_cast %12 : vector<8xf32> to vector<8x1xf32>
    %14 = vector.broadcast %13 : vector<8x1xf32> to vector<8x8xf32>
    %15 = arith.subf %11, %14 : vector<8x8xf32>
    %16 = math.exp %15 : vector<8x8xf32>
    %cst_7 = arith.constant dense<0.000000e+00> : vector<8xf32>
    %17 = vector.multi_reduction <add>, %16, %cst_7 [1] : vector<8x8xf32> to vector<8xf32>
    %18 = vector.shape_cast %17 : vector<8xf32> to vector<8x1xf32>
    %19 = tpu.reciprocal %18 {approx = true} : vector<8x1xf32> -> vector<8x1xf32>
    %20 = vector.broadcast %19 : vector<8x1xf32> to vector<8x8xf32>
    %21 = arith.mulf %16, %20 : vector<8x8xf32>
    %22 = arith.truncf %21 : vector<8x8xf32> to vector<8x8xbf16>
    %cst_8 = arith.constant dense<0.000000e+00> : vector<8x8xf32>
    %23 = tpu.matmul %22, %10, %cst_8 {dimension_numbers = #tpu.dot_dimension_numbers<[1], [0], [0], [1], [0, 0, 1, 1], [], []>} : vector<8x8xbf16>, vector<8x8xbf16>, vector<8x8xf32> -> vector<8x8xf32>
    %24 = arith.truncf %23 : vector<8x8xf32> to vector<8x8xbf16>
    %c0_9 = arith.constant 0 : index
    %c0_10 = arith.constant 0 : index
    %c0_11 = arith.constant 0 : index
    %25 = vector.load %arg3[%c0_9, %c0_10, %c0_11] : memref<1x8x32xbf16, #tpu.memory_space<vmem>>, vector<1x8x8xbf16>
    %26 = vector.shape_cast %25 : vector<1x8x8xbf16> to vector<8x8xbf16>
    %27 = vector.shape_cast %24 : vector<8x8xbf16> to vector<1x8x8xbf16>
    tpu.vector_store %arg3[%c0_9, %c0_10, %c0_11], %27 {strides = array<i32>} : memref<1x8x32xbf16, #tpu.memory_space<vmem>>, vector<1x8x8xbf16>,
    %28 = vector.extract_strided_slice %1 {offsets = [0, 8], sizes = [8, 8], strides = [1, 1]} : vector<8x32xbf16> to vector<8x8xbf16>
    %cst_12 = arith.constant 3.535160e-01 : bf16
    %29 = vector.broadcast %cst_12 : bf16 to vector<8x8xbf16>
    %30 = arith.mulf %28, %29 : vector<8x8xbf16>
    %31 = vector.extract_strided_slice %4 {offsets = [0, 8], sizes = [8, 8], strides = [1, 1]} : vector<8x32xbf16> to vector<8x8xbf16>
    %32 = vector.extract_strided_slice %5 {offsets = [0, 8], sizes = [8, 8], strides = [1, 1]} : vector<8x32xbf16> to vector<8x8xbf16>
    %cst_13 = arith.constant dense<0.000000e+00> : vector<8x8xf32>
    %33 = tpu.matmul %30, %31, %cst_13 {dimension_numbers = #tpu.dot_dimension_numbers<[1], [1], [0], [0], [0, 0, 1, 0], [], []>} : vector<8x8xbf16>, vector<8x8xbf16>, vector<8x8xf32> -> vector<8x8xf32>
    %cst_14 = arith.constant dense<0xFF800000> : vector<8xf32>
    %34 = vector.multi_reduction <maximumf>, %33, %cst_14 [1] : vector<8x8xf32> to vector<8xf32>
    %35 = vector.shape_cast %34 : vector<8xf32> to vector<8x1xf32>
    %36 = vector.broadcast %35 : vector<8x1xf32> to vector<8x8xf32>
    %37 = arith.subf %33, %36 : vector<8x8xf32>
    %38 = math.exp %37 : vector<8x8xf32>
    %cst_15 = arith.constant dense<0.000000e+00> : vector<8xf32>
    %39 = vector.multi_reduction <add>, %38, %cst_15 [1] : vector<8x8xf32> to vector<8xf32>
    %40 = vector.shape_cast %39 : vector<8xf32> to vector<8x1xf32>
    %41 = tpu.reciprocal %40 {approx = true} : vector<8x1xf32> -> vector<8x1xf32>
    %42 = vector.broadcast %41 : vector<8x1xf32> to vector<8x8xf32>
    %43 = arith.mulf %38, %42 : vector<8x8xf32>
    %44 = arith.truncf %43 : vector<8x8xf32> to vector<8x8xbf16>
    %cst_16 = arith.constant dense<0.000000e+00> : vector<8x8xf32>
    %45 = tpu.matmul %44, %32, %cst_16 {dimension_numbers = #tpu.dot_dimension_numbers<[1], [0], [0], [1], [0, 0, 1, 1], [], []>} : vector<8x8xbf16>, vector<8x8xbf16>, vector<8x8xf32> -> vector<8x8xf32>
    %46 = arith.truncf %45 : vector<8x8xf32> to vector<8x8xbf16>
    %c0_17 = arith.constant 0 : index
    %c0_18 = arith.constant 0 : index
    %c8 = arith.constant 8 : index
    %47 = vector.load %arg3[%c0_17, %c0_18, %c8] : memref<1x8x32xbf16, #tpu.memory_space<vmem>>, vector<1x8x8xbf16>
    %48 = vector.shape_cast %47 : vector<1x8x8xbf16> to vector<8x8xbf16>
    %49 = vector.shape_cast %46 : vector<8x8xbf16> to vector<1x8x8xbf16>
    tpu.vector_store %arg3[%c0_17, %c0_18, %c8], %49 {strides = array<i32>} : memref<1x8x32xbf16, #tpu.memory_space<vmem>>, vector<1x8x8xbf16>,
    %50 = vector.extract_strided_slice %1 {offsets = [0, 16], sizes = [8, 8], strides = [1, 1]} : vector<8x32xbf16> to vector<8x8xbf16>
    %cst_19 = arith.constant 3.535160e-01 : bf16
    %51 = vector.broadcast %cst_19 : bf16 to vector<8x8xbf16>
    %52 = arith.mulf %50, %51 : vector<8x8xbf16>
    %53 = vector.extract_strided_slice %4 {offsets = [0, 16], sizes = [8, 8], strides = [1, 1]} : vector<8x32xbf16> to vector<8x8xbf16>
    %54 = vector.extract_strided_slice %5 {offsets = [0, 16], sizes = [8, 8], strides = [1, 1]} : vector<8x32xbf16> to vector<8x8xbf16>
    %cst_20 = arith.constant dense<0.000000e+00> : vector<8x8xf32>
    %55 = tpu.matmul %52, %53, %cst_20 {dimension_numbers = #tpu.dot_dimension_numbers<[1], [1], [0], [0], [0, 0, 1, 0], [], []>} : vector<8x8xbf16>, vector<8x8xbf16>, vector<8x8xf32> -> vector<8x8xf32>
    %cst_21 = arith.constant dense<0xFF800000> : vector<8xf32>
    %56 = vector.multi_reduction <maximumf>, %55, %cst_21 [1] : vector<8x8xf32> to vector<8xf32>
    %57 = vector.shape_cast %56 : vector<8xf32> to vector<8x1xf32>
    %58 = vector.broadcast %57 : vector<8x1xf32> to vector<8x8xf32>
    %59 = arith.subf %55, %58 : vector<8x8xf32>
    %60 = math.exp %59 : vector<8x8xf32>
    %cst_22 = arith.constant dense<0.000000e+00> : vector<8xf32>
    %61 = vector.multi_reduction <add>, %60, %cst_22 [1] : vector<8x8xf32> to vector<8xf32>
    %62 = vector.shape_cast %61 : vector<8xf32> to vector<8x1xf32>
    %63 = tpu.reciprocal %62 {approx = true} : vector<8x1xf32> -> vector<8x1xf32>
    %64 = vector.broadcast %63 : vector<8x1xf32> to vector<8x8xf32>
    %65 = arith.mulf %60, %64 : vector<8x8xf32>
    %66 = arith.truncf %65 : vector<8x8xf32> to vector<8x8xbf16>
    %cst_23 = arith.constant dense<0.000000e+00> : vector<8x8xf32>
    %67 = tpu.matmul %66, %54, %cst_23 {dimension_numbers = #tpu.dot_dimension_numbers<[1], [0], [0], [1], [0, 0, 1, 1], [], []>} : vector<8x8xbf16>, vector<8x8xbf16>, vector<8x8xf32> -> vector<8x8xf32>
    %68 = arith.truncf %67 : vector<8x8xf32> to vector<8x8xbf16>
    %c0_24 = arith.constant 0 : index
    %c0_25 = arith.constant 0 : index
    %c16 = arith.constant 16 : index
    %69 = vector.load %arg3[%c0_24, %c0_25, %c16] : memref<1x8x32xbf16, #tpu.memory_space<vmem>>, vector<1x8x8xbf16>
    %70 = vector.shape_cast %69 : vector<1x8x8xbf16> to vector<8x8xbf16>
    %71 = vector.shape_cast %68 : vector<8x8xbf16> to vector<1x8x8xbf16>
    tpu.vector_store %arg3[%c0_24, %c0_25, %c16], %71 {strides = array<i32>} : memref<1x8x32xbf16, #tpu.memory_space<vmem>>, vector<1x8x8xbf16>,
    %72 = vector.extract_strided_slice %1 {offsets = [0, 24], sizes = [8, 8], strides = [1, 1]} : vector<8x32xbf16> to vector<8x8xbf16>
    %cst_26 = arith.constant 3.535160e-01 : bf16
    %73 = vector.broadcast %cst_26 : bf16 to vector<8x8xbf16>
    %74 = arith.mulf %72, %73 : vector<8x8xbf16>
    %75 = vector.extract_strided_slice %4 {offsets = [0, 24], sizes = [8, 8], strides = [1, 1]} : vector<8x32xbf16> to vector<8x8xbf16>
    %76 = vector.extract_strided_slice %5 {offsets = [0, 24], sizes = [8, 8], strides = [1, 1]} : vector<8x32xbf16> to vector<8x8xbf16>
    %cst_27 = arith.constant dense<0.000000e+00> : vector<8x8xf32>
    %77 = tpu.matmul %74, %75, %cst_27 {dimension_numbers = #tpu.dot_dimension_numbers<[1], [1], [0], [0], [0, 0, 1, 0], [], []>} : vector<8x8xbf16>, vector<8x8xbf16>, vector<8x8xf32> -> vector<8x8xf32>
    %cst_28 = arith.constant dense<0xFF800000> : vector<8xf32>
    %78 = vector.multi_reduction <maximumf>, %77, %cst_28 [1] : vector<8x8xf32> to vector<8xf32>
    %79 = vector.shape_cast %78 : vector<8xf32> to vector<8x1xf32>
    %80 = vector.broadcast %79 : vector<8x1xf32> to vector<8x8xf32>
    %81 = arith.subf %77, %80 : vector<8x8xf32>
    %82 = math.exp %81 : vector<8x8xf32>
    %cst_29 = arith.constant dense<0.000000e+00> : vector<8xf32>
    %83 = vector.multi_reduction <add>, %82, %cst_29 [1] : vector<8x8xf32> to vector<8xf32>
    %84 = vector.shape_cast %83 : vector<8xf32> to vector<8x1xf32>
    %85 = tpu.reciprocal %84 {approx = true} : vector<8x1xf32> -> vector<8x1xf32>
    %86 = vector.broadcast %85 : vector<8x1xf32> to vector<8x8xf32>
    %87 = arith.mulf %82, %86 : vector<8x8xf32>
    %88 = arith.truncf %87 : vector<8x8xf32> to vector<8x8xbf16>
    %cst_30 = arith.constant dense<0.000000e+00> : vector<8x8xf32>
    %89 = tpu.matmul %88, %76, %cst_30 {dimension_numbers = #tpu.dot_dimension_numbers<[1], [0], [0], [1], [0, 0, 1, 1], [], []>} : vector<8x8xbf16>, vector<8x8xbf16>, vector<8x8xf32> -> vector<8x8xf32>
    %90 = arith.truncf %89 : vector<8x8xf32> to vector<8x8xbf16>
    %c0_31 = arith.constant 0 : index
    %c0_32 = arith.constant 0 : index
    %c24 = arith.constant 24 : index
    %91 = vector.load %arg3[%c0_31, %c0_32, %c24] : memref<1x8x32xbf16, #tpu.memory_space<vmem>>, vector<1x8x8xbf16>
    %92 = vector.shape_cast %91 : vector<1x8x8xbf16> to vector<8x8xbf16>
    %93 = vector.shape_cast %90 : vector<8x8xbf16> to vector<1x8x8xbf16>
    tpu.vector_store %arg3[%c0_31, %c0_32, %c24], %93 {strides = array<i32>} : memref<1x8x32xbf16, #tpu.memory_space<vmem>>, vector<1x8x8xbf16>,
    return
  }
  func.func @transform_0(%arg0: i32) -> (i32, i32, i32) {
    %c0_i32 = arith.constant 0 : i32
    %c0_i32_0 = arith.constant 0 : i32
    %c0_i32_1 = arith.constant 0 : i32
    return %arg0, %c0_i32, %c0_i32_0 : i32, i32, i32
  }
  func.func @transform_1(%arg0: i32) -> (i32, i32, i32) {
    %c0_i32 = arith.constant 0 : i32
    %c0_i32_0 = arith.constant 0 : i32
    %c0_i32_1 = arith.constant 0 : i32
    return %arg0, %c0_i32, %c0_i32_0 : i32, i32, i32
  }
  func.func @transform_2(%arg0: i32) -> (i32, i32, i32) {
    %c0_i32 = arith.constant 0 : i32
    %c0_i32_0 = arith.constant 0 : i32
    %c0_i32_1 = arith.constant 0 : i32
    return %arg0, %c0_i32, %c0_i32_0 : i32, i32, i32
  }
}

</mosaic_0001>

<bundles_post_ra>
// kernel: tpu_custom_call.1
= control target key start
LH: loop header
LB: loop body
LE: loop exit
PB: predicated region body
PF: predicated region fallthrough
CT: control target
= control target key end

     0   :  { %6 = vsyncpa [#allocation3], 0  ;;  %s482_s0 = inlined_call_operand.hbm [shape: f32[8,128], index: 0, kind: input, shape index: {}]   ;;  %s483_s1 = inlined_call_operand.hbm [shape: f32[16,128], index: 1, kind: output, shape index: {}]  }
   0x1   :  { %7 = vsyncpa [#allocation4], 0 }
   0x2   :  { %9 = vsyncpa [#allocation4 + $0x1], 0  ;;  %s352_s6 = smov 0   ;;  %s354_s7 = smov 0  }
   0x3   :  { %s356_s8 = smov 0   ;;  %s358_s9 = smov 0  }
   0x4 LB: > { %s373_s10 = sadd.s32 4294967295, %s338_s9   ;;  %s184_s11 = sadd.s32 4294967294, %s338_s9   ;;  %s338_s9 = sphi %s358_s9, %s499_s9   ;;  %s334_s8 = sphi %s356_s8, %s498_s8   ;;  %s330_s7 = sphi %s354_s7, %s497_s7   ;;  %s326_s6 = sphi %s352_s6, %s496_s6  }
   0x5   : > { %s377_s12 = sadd.s32 1, %s338_s9   ;;  %s43_s13 = sadd.s32 1, %s334_s8 }
   0x6   : > { %s40_s14 = ssub.s32 %s338_s9, %s377_s12  ;;  %p53_p0 = scmp.ne.s32.totalorder %s334_s8, %s330_s7 }
   0x7   : > { %p41_p1 = scmp.eq.s32.totalorder %s40_s14, 0  ;;  %p54_p2 = scmp.eq.s32.totalorder %s373_s10, 1 }
   0x8   : > { %p59_p3 = scmp.ne.s32.totalorder %s330_s7, %s326_s6  ;;  %p60_p4 = scmp.eq.s32.totalorder %s184_s11, 1 }
   0x9   : > { %s388_s15 = scalar_select %p41_p1, %s334_s8, %s43_s13  }
   0xa   : > { %p390_p5 = por %p54_p2, %p53_p0  ;;  %p394_p6 = por %p60_p4, %p59_p3 }
   0xb   : > { %p185_p7 = scmp.ge.s32.totalorder %s338_s9, 1  ;;  %p67_p8 = scmp.lt.s32.totalorder %s338_s9, 3 }
   0xc   : > { %s487_s16 = scalar_select %p390_p5, 1, 0 }
   0xd   : > { %s488_s17 = scalar_select %p394_p6, 1, 0 }
   0xe   : > { %p484_p9 = scmp.eq.s32.totalorder %s373_s10, 0  ;;  %p401_p10 = pnand %p185_p7, %p67_p8 }
   0xf   : > { %s340_s19 = smov [#allocation2]   ;;  %s244_s24 = scalar_lea.hbm %s482_s0, 128 }
  0x10   : > { %s489_s18 = scalar_select %p401_p10, 1, 0 }
  0x11   : > { %s80_s20 = sshll.u32 %s340_s19, 4  ;;  %p200_p11 = pneg %p401_p10  ;;  %s81_s20 = int_to_ptr.vmem [resolvable:$true] %s80_s20 }
  0x12   : > { %p245_p13 = scmp.ne.s32.totalorder %s482_s0, %s244_s24  ;;  %p251_p3 = scmp.lt.u32.totalorder %s244_s24, %s482_s0 }
  0x13   : > { %p409_p12 = pnand %p484_p9, %p200_p11 }
  0x15   : > { %p246_p0 = pneg %p409_p12 }
  0x17   : > { %p247_p1 = pnand %p246_p0, %p245_p13 }
  0x19   : > { %p248_p2 = pneg %p247_p1 }
  0x1b   : > { %p253_p4 = pnand %p251_p3, %p248_p2 }
  0x1d   : > { %256 = shalt.err (!%p253_p4)
}
  0x1e   : > { %s257_s29 = scalar_lea.vmem %s81_s20, 128  ;;  %p265_p9 = scmp.lt.s32.totalorder %s81_s20, %s81_s20 }
  0x1f   : > { %p258_p7 = scmp.ne.s32.totalorder %s81_s20, %s257_s29  ;;  %p266_p6 = scmp.lt.s32.totalorder %s257_s29, %s257_s29 }
  0x21   : > { %p260_p8 = pnand %p258_p7, %p246_p0  ;;  %p267_p5 = por %p266_p6, %p265_p9 }
  0x23   : > { %p261_p11 = pneg %p260_p8 }
  0x25   : > { %p268_p10 = pnand %p267_p5, %p261_p11 }
  0x27   : > { %271 = shalt.err (!%p268_p10)
}
  0x28   : > { %203 = dma.hbm_to_vmem [thread:$0]  (!%p409_p12), %s482_s0, 128, %s81_s20, [#allocation3]  }
  0x29   : > { %p491_p13 = scmp.ne.s32.totalorder %s489_s18, 0 }
  0x2a   : > { %p492_p1 = scmp.eq.s32.totalorder (!%p491_p13), %s373_s10, 0 }
  0x2b   : > { %93 = sbr.rel (%p491_p13) target bundleno = 77 (0x4d), region = 24 }
  0x32   : > { %317 = dma.done.wait (%p492_p1), [#allocation3], 128   ;;  %p493_p0 = pmov %p492_p1 }
  0x33   : > { %s105_s3 = sand.u32 1, %s330_s7   ;;  %s191_s13 = sshll.u32 %s373_s10, 7  ;;  %v108_v0 = vld [vmem:[#allocation2] sm:$0xff] }
  0x34   : > { %319 = vsyncadd (%p493_p0), [#allocation3], 4294967168  ;;  %s189_s4 = sshll.u32 %s105_s3, 3  ;;  %v109_v1 = vmul.f32 2.0, %v108_v0  ;;  %s442_s19 = scalar_lea.hbm %s483_s1, %s191_s13 }
  0x35   : > { %s107_s5 = scalar_lea.vmem [#allocation5], %s189_s4  ;;  %s112_s20 = scalar_lea.sflag [#allocation4], %s105_s3 }
  0x36   : > { %s125_s11 = sshll.u32 %s107_s5, 4  ;;  %110 = vst [vmem:[%s107_s5] sm:$0xff] %v109_v1  ;;  %p494_p6 = scmp.ne.s32.totalorder %s487_s16, 0  ;;  %s437_s11 = int_to_ptr.vmem [resolvable:$true] %s125_s11 }
  0x37   : > { %s272_s21 = scalar_lea.vmem %s437_s11, 128  ;;  %s341_s10 = smov [#allocation5]  }
  0x38   : > { %p273_p5 = scmp.ne.s32.totalorder %s437_s11, %s272_s21  ;;  %s276_s22 = sshll.u32 %s341_s10, 4  ;;  %s277_s22 = int_to_ptr.vmem [resolvable:$false] %s276_s22 }
  0x39   : > { %s278_s23 = scalar_lea.vmem %s277_s22, 256  ;;  %p279_p12 = scmp.lt.s32.totalorder %s437_s11, %s277_s22 }
  0x3a   : > { %p274_p9 = pnand %p273_p5, %p494_p6  ;;  %p280_p2 = scmp.lt.s32.totalorder %s278_s23, %s272_s21 }
  0x3c   : > { %p275_p10 = pneg %p274_p9  ;;  %p281_p3 = por %p280_p2, %p279_p12 }
  0x3e   : > { %p282_p4 = pnand %p281_p3, %p275_p10 }
  0x40   : > { %285 = shalt.err (!%p282_p4)
}
  0x41   : > { %s286_s24 = scalar_lea.hbm %s442_s19, 128  ;;  %s290_s27 = scalar_lea.hbm %s483_s1, 256 }
  0x42   : > { %p287_p7 = scmp.ne.s32.totalorder %s442_s19, %s286_s24  ;;  %p291_p13 = scmp.lt.u32.totalorder %s442_s19, %s483_s1 }
  0x43   : > { %p292_p1 = scmp.lt.u32.totalorder %s290_s27, %s286_s24  ;;  %p294_p5 = scmp.lt.u32.totalorder %s286_s24, %s442_s19 }
  0x44   : > { %p288_p8 = pnand %p287_p7, %p494_p6 }
  0x45   : > { %p293_p0 = por %p292_p1, %p291_p13 }
  0x46   : > { %p289_p11 = pneg %p288_p8 }
  0x47   : > { %p295_p9 = por %p294_p5, %p293_p0 }
  0x49   : > { %p296_p10 = pnand %p295_p9, %p289_p11 }
  0x4b   : > { %299 = shalt.err (!%p296_p10)
}
  0x4c   : > { %198 = dma.vmem_to_hbm [thread:$0]  (%p494_p6), %s437_s11, 128, %s442_s19, %s112_s20  }
  0x4d PF: > { %p210_p12 = scmp.ge.s32.totalorder %s338_s9, 2  ;;  %s137_s30 = sand.u32 1, %s326_s6  }
  0x4e   : > { %p495_p2 = scmp.ne.s32.totalorder %s488_s17, 0  ;;  %s138_s2 = scalar_lea.sflag [#allocation4], %s137_s30 }
  0x50   : > { %p205_p3 = pnand %p210_p12, %p495_p2 }
  0x52   : > { %321 = dma.done.wait (!%p205_p3), %s138_s2, 128  }
  0x53   : > { %323 = vsyncadd (!%p205_p3), %s138_s2, 4294967168  ;;  %p12_p4 = scmp.ge.s32.totalorder %s377_s12, 4   ;;  %s496_s6 = smov %s330_s7 }
  0x54   : > { %s497_s7 = smov %s334_s8  ;;  %s498_s8 = smov %s388_s15 }
  0x55   : > { %s499_s9 = smov %s377_s12  ;;  %14 = sbr.rel (!%p12_p4) target bundleno = 4 (0x4), region = 61 }
  0x5c   :  { %143 = vsyncpa [#allocation3], 1 }
  0x5d   :  { %145 = vsyncpa [#allocation3 + $0x1], 1 }
  0x5e   :  { %146 = vsyncpa [#allocation4], 1 }
  0x5f   :  { %148 = vsyncpa [#allocation4 + $0x1], 1 }

// kernel: transformer_forward.29
= control target key start
LH: loop header
LB: loop body
LE: loop exit
PB: predicated region body
PF: predicated region fallthrough
CT: control target
= control target key end

     0   :  { %v181_v0 = vmov 0.0   ;;  %vm182_vm0 = vmmov 0   ;;  %vm54_vm1 = vcmask 261120   ;;  %s255_s2 = inlined_call_operand.vmem [shape: bf16[32,32], index: 2, kind: input, shape index: {}]   ;;  %s256_s0 = inlined_call_operand.vmem [shape: bf16[16,32], index: 0, kind: input, shape index: {}]   ;;  %s257_s3 = inlined_call_operand.vmem [shape: f32[1,32], index: 3, kind: input, shape index: {}]   ;;  %s258_s1 = inlined_call_operand.vmem [shape: f32[16,32], index: 1, kind: input, shape index: {}]   ;;  %s259_s4 = inlined_call_operand.vmem [shape: f32[1,32], index: 4, kind: input, shape index: {}]   ;;  %s260_s5 = inlined_call_operand.vmem [shape: f32[1,32], index: 5, kind: input, shape index: {}]   ;;  %s261_s6 = inlined_call_operand.vmem [shape: f32[16,32], index: 6, kind: output, shape index: {}]  }
   0x1   :  { %164 = vmatprep.subr.bf16.mxu0 %v181_v0  ;;  %v174_v1 = vld [vmem:[%s255_s2] sm:$0xff]   ;;  %168 = vmatprep.mubr.msk.bf16.mxu0 %vm182_vm0, %v181_v0  ;;  %v175_v2 = vld [vmem:[%s255_s2 + $0x8] sm:$0xff]  }
   0x2   :  { %165 = vmatpush3.bf16.msra.mxu0 %v174_v1  ;;  %v176_v3 = vld [vmem:[%s256_s0] sm:$0xff]   ;;  %v100_v10 = vld [vmem:[%s258_s1 + $0x8] sm:$0xff] }
   0x3   :  { %166 = vmatprep.subr.bf16.mxu0 %v181_v0  ;;  %v154_v4 = vld [vmem:[%s257_s3] ss:$0 sm:$0xff] }
   0x4   :  { %v99_v6 = vld [vmem:[%s258_s1] sm:$0xff] }
   0x5   :  { %v159_v34 = vld [vmem:[%s259_s4] ss:$0 sm:$0xff] }
   0x6   :  { %167 = vmatpush3.bf16.msra.mxu0 %v175_v2  ;;  %v160_v36 = vld [vmem:[%s260_s5] ss:$0 sm:$0xff] }
   0x9   :  { %169 = vmatmul.mubr.msk.bf16.vlgmr.msra.gmra.mrb[0].mxu0 %vm54_vm1, %v176_v3 }
  0xdc   :  { %v92_v5 = vpop.f32.mrb[0].mxu0 }
  0xdd   :  { %v93_v7 = vadd.f32 %v154_v4, %v92_v5  ;;  %v170_v8 = vpop.f32.mrb[1].mxu0 }
  0xde   :  { %v95_v9 = vpop.f32.mrb[2].mxu0 }
  0xdf   :  { %v96_v11 = vadd.f32 %v154_v4, %v95_v9  ;;  %v171_v12 = vpop.f32.mrb[3].mxu0  ;;  %v101_v13 = vadd.f32 %v99_v6, %v93_v7 }
  0xe1   :  { %v105_v14 = vsel %vm54_vm1, %v101_v13, 0.0  ;;  %v102_v15 = vadd.f32 %v100_v10, %v96_v11 }
  0xe2   :  { %106 = vadd.xlane.f32.xlu0 %v105_v14 }
  0xe3   :  { %v108_v16 = vsel %vm54_vm1, %v102_v15, 0.0 }
  0xe6   :  { %109 = vadd.xlane.f32.xlu0 %v108_v16 }
 0x16f   :  { %v107_v17 = vpop.xlane.xlu0 %106 }
 0x170   :  { %v112_v18 = vmul.f32 0.03125, %v107_v17 }
 0x172   :  { %v114_v19 = vsub.f32 %v101_v13, %v112_v18 }
 0x173   :  { %v110_v20 = vpop.xlane.xlu0 %109 }
 0x174   :  { %v113_v21 = vmul.f32 0.03125, %v110_v20  ;;  %v116_v22 = vmul.f32 %v114_v19, %v114_v19 }
 0x176   :  { %v115_v23 = vsub.f32 %v102_v15, %v113_v21  ;;  %v118_v24 = vsel %vm54_vm1, %v116_v22, 0.0 }
 0x177   :  { %119 = vadd.xlane.f32.xlu1 %v118_v24 }
 0x178   :  { %v117_v25 = vmul.f32 %v115_v23, %v115_v23 }
 0x17a   :  { %v121_v26 = vsel %vm54_vm1, %v117_v25, 0.0 }
 0x17b   :  { %122 = vadd.xlane.f32.xlu1 %v121_v26 }
 0x204   :  { %v120_v27 = vpop.xlane.xlu1 %119 }
 0x205   :  { %v124_v28 = vmul.f32 0.03125, %v120_v27 }
 0x207   :  { %v126_v29 = vadd.f32 1e-05, %v124_v28 }
 0x208   :  { %v123_v30 = vpop.xlane.xlu1 %122 }
 0x209   :  { %177 = vrsqrt.f32 %v126_v29  ;;  %v125_v31 = vmul.f32 0.03125, %v123_v30 }
 0x20b   :  { %v127_v32 = vadd.f32 1e-05, %v125_v31 }
 0x20d   :  { %179 = vrsqrt.f32 %v127_v32 }
 0x213   :  { %v178_v33 = vpop.eup %177 }
 0x214   :  { %v130_v35 = vmul.f32 %v178_v33, %v114_v19 }
 0x216   :  { %v138_v37 = vmul.f32 %v159_v34, %v130_v35 }
 0x217   :  { %v180_v38 = vpop.eup %179 }
 0x218   :  { %v146_v39 = vadd.f32 %v160_v36, %v138_v37  ;;  %v131_v40 = vmul.f32 %v180_v38, %v115_v23 }
 0x21a   :  { %148 = vst.msk [vmem:[%s261_s6] sm:$0xff] %vm54_vm1, %v146_v39  ;;  %v139_v41 = vmul.f32 %v159_v34, %v131_v40 }
 0x21c   :  { %v147_v42 = vadd.f32 %v160_v36, %v139_v41 }
 0x21e   :  { %149 = vst.msk [vmem:[%s261_s6 + $0x8] sm:$0xff] %vm54_vm1, %v147_v42 }

// kernel: transformer_forward.27
= control target key start
LH: loop header
LB: loop body
LE: loop exit
PB: predicated region body
PF: predicated region fallthrough
CT: control target
= control target key end

     0   :  { %vm19_vm0 = vcmask 785408   ;;  %v145_v0 = vmov 0.0   ;;  %vm146_vm1 = vmmov 0   ;;  %vm43_vm2 = vcmask 261120   ;;  %s192_s1 = inlined_call_operand.vmem [shape: bf16[32,96], index: 1, kind: input, shape index: {}]   ;;  %s193_s0 = inlined_call_operand.vmem [shape: f32[16,32], index: 0, kind: input, shape index: {}]   ;;  %s194_s2 = inlined_call_operand.vmem [shape: f32[1,96], index: 2, kind: input, shape index: {}]   ;;  %s195_s3 = inlined_call_operand.vmem [shape: bf16[16,96], index: 3, kind: output, shape index: {}]  }
   0x1   :  { %133 = vmatprep.subr.bf16.mxu0 %v145_v0  ;;  %v143_v1 = vld [vmem:[%s192_s1] sm:$0xff]   ;;  %137 = vmatprep.mubr.msk.bf16.mxu0 %vm146_vm1, %v145_v0  ;;  %20 = vst.msk [vmem:[#allocation2] sm:$0xff] %vm19_vm0, %v145_v0  ;;  %21 = vst.msk [vmem:[#allocation2 + $0x8] sm:$0xff] %vm19_vm0, %v145_v0  ;;  %v144_v2 = vld [vmem:[%s192_s1 + $0x8] sm:$0xff]   ;;  %vm115_vm3 = vcmask 781312  }
   0x2   :  { %134 = vmatpush3.bf16.msra.mxu0 %v143_v1  ;;  %v24_v3 = vld [vmem:[%s193_s0] sm:$0xff]  ;;  %v25_v4 = vld [vmem:[%s193_s0 + $0x8] sm:$0xff] }
   0x3   :  { %135 = vmatprep.subr.bf16.mxu0 %v145_v0  ;;  %v26_v5 = vpack.c.bf16 %v25_v4, %v24_v3  ;;  %v125_v14 = vld [vmem:[%s194_s2] ss:$0 sm:$0xff] }
   0x6   :  { %136 = vmatpush3.bf16.msra.mxu0 %v144_v2 }
   0x8   :  { %v22_v6 = vld [vmem:[#allocation2] sm:$0xff]  ;;  %v23_v8 = vld [vmem:[#allocation2 + $0x8] sm:$0xff] }
   0x9   :  { %138 = vmatmul.mubr.msk.bf16.vlgmr.msra.gmra.mrb[0].mxu0 %vm43_vm2, %v26_v5 }
  0xdc   :  { %v81_v7 = vpop.f32.mrb[0].mxu0 }
  0xdd   :  { %v88_v9 = vadd.f32 %v81_v7, %v22_v6  ;;  %v139_v10 = vpop.f32.mrb[1].mxu0 }
  0xde   :  { %v84_v11 = vpop.f32.mrb[2].mxu0 }
  0xdf   :  { %91 = vst.msk [vmem:[#allocation2] sm:$0xff] %vm19_vm0, %v88_v9  ;;  %v89_v12 = vadd.f32 %v84_v11, %v23_v8  ;;  %v140_v13 = vpop.f32.mrb[3].mxu0 }
  0xe1   :  { %92 = vst.msk [vmem:[#allocation2 + $0x8] sm:$0xff] %vm19_vm0, %v89_v12 }
  0xe6   :  { %v96_v15 = vld [vmem:[#allocation2] sm:$0xff] }
  0xe7   :  { %v105_v16 = vadd.f32 %v125_v14, %v96_v15 }
  0xe8   :  { %v97_v17 = vld [vmem:[#allocation2 + $0x8] sm:$0xff] }
  0xe9   :  { %v128_v18 = vpack.c.bf16 %v105_v16, %v105_v16  ;;  %v106_v19 = vadd.f32 %v125_v14, %v97_v17 }
  0xeb   :  { %116 = vst.msk [vmem:[%s195_s3] sm:$0xf] %vm115_vm3, %v128_v18  ;;  %v129_v20 = vpack.c.bf16 %v106_v19, %v106_v19 }
  0xed   :  { %117 = vst.msk [vmem:[%s195_s3 + $0x4] sm:$0xf] %vm115_vm3, %v129_v20 }

// kernel: transformer_forward.28
= control target key start
LH: loop header
LB: loop body
LE: loop exit
PB: predicated region body
PF: predicated region fallthrough
CT: control target
= control target key end

     0   :  { %s809_s6 = smov 0   ;;  %s897_s0 = inlined_call_operand.vmem [shape: bf16[2,8,96], index: 0, kind: input, shape index: {}]   ;;  %s898_s1 = inlined_call_operand.vmem [shape: bf16[2,8,32], index: 1, kind: output, shape index: {}]  }
   0x1 LB: > { %s645_s7 = sadd.s32 4294967295, %s781_s6   ;;  %p649_p0 = scmp.ge.s32.totalorder %s781_s6, 1  ;;  %s781_s6 = sphi %s809_s6, %s11_s6  }
   0x2   : > { %p86_p1 = scmp.lt.s32.totalorder %s781_s6, 3 }
   0x4   : > { %p87_p2 = pnand %p649_p0, %p86_p1 }
   0x5   : > { %p104_p3 = scmp.lt.s32.totalorder (!%p87_p2), %s645_s7, 1  ;;  %v783_v0 = vmov (!%p87_p2), 0.0   ;;  %vm784_vm0 = vmmov (!%p87_p2), 0   ;;  %s785_s12 = smov (!%p87_p2), 96   ;;  %vm121_vm1 = vcmask (!%p87_p2), 64512   ;;  %vm185_vm2 = vcmask (!%p87_p2), 1043456  }
   0x6   : > { %90 = sbr.rel (%p87_p2) target bundleno = 1597 (0x63d), region = 24  ;;  %686 = vmatprep.subr.bf16.mxu0 (!%p87_p2), %v783_v0  ;;  %688 = vmatprep.mubr.msk.bf16.mxu0 (!%p87_p2), %vm784_vm0, %v783_v0  ;;  %s786_s13 = smov (!%p87_p2), 64   ;;  %vm230_vm3 = vcmask (!%p87_p2), 60416   ;;  %vm352_vm4 = vcmask (!%p87_p2), 126016   ;;  %vm471_vm5 = vcmask (!%p87_p2), 191616   ;;  %vm590_vm6 = vcmask (!%p87_p2), 257216  }
   0x7   : > { %692 = vmatprep.subr.bf16.mxu1 (!%p87_p2), %v783_v0  ;;  %694 = vmatprep.mubr.msk.bf16.mxu1 (!%p87_p2), %vm784_vm0, %v783_v0  ;;  %s787_s14 = smov (!%p87_p2), 88   ;;  %s788_s15 = smov (!%p87_p2), 72  }
   0x8   : > { %s789_s16 = smov (!%p87_p2), 120   ;;  %s790_s17 = smov (!%p87_p2), 80  }
   0x9   : > { %s791_s18 = smov (!%p87_p2), 112   ;;  %s792_s19 = smov (!%p87_p2), 104  }
   0xa   : > { %s793_s23 = smov (!%p87_p2), 56   ;;  %s794_s24 = smov (!%p87_p2), 48  }
   0xb   : > { %s795_s25 = smov (!%p87_p2), 40   ;;  %s796_s26 = smov (!%p87_p2), 8  }
   0xc   : > { %s797_s27 = smov (!%p87_p2), 16   ;;  %s798_s28 = smov (!%p87_p2), 24  }
   0xd   : > { %s900_s7 = smov (!%p104_p3, %s645_s7), 1 }
   0xe   : > { %s650_s8 = sshll.u32 %s900_s7, 2 }
   0xf   : > { %s107_s11 = scalar_lea.vmem %s897_s0, %s650_s8  ;;  %s867_s22 = scalar_lea.vmem %s898_s1, %s650_s8 }
  0x10   : > { %v114_v1 = vld [vmem:[%s107_s11] sm:$0xf] }
  0x11   : > { %v831_v2 = vcombine.low %v114_v1, %v114_v1  ;;  %v115_v5 = vmul.bf16 1052065461, %v114_v1 }
  0x13   : > { %119 = vrot.lane.b32.xlu0 %v831_v2, %s785_s12  ;;  %180 = vrot.lane.b32.xlu1 %v831_v2, %s786_s13  ;;  %v655_v18 = vcombine.low %v115_v5, %v115_v5 }
  0x17   : > { %237 = vrot.lane.b32.xlu1 %v831_v2, %s787_s14 }
  0x85   : > { %v120_v3 = vpop.permute.xlu0 %119  ;;  %v181_v11 = vpop.permute.xlu1 %180 }
  0x86   : > { %v126_v4 = vsel %vm121_vm1, %v120_v3, 0  ;;  %v187_v12 = vsel %vm185_vm2, %v181_v11, 0 }
  0x87   : > { %687 = vmatpush3.bf16.xpose.msra.mxu0 %v126_v4  ;;  %693 = vmatpush3.bf16.msra.mxu1 %v187_v12 }
  0x88   : > { %704 = vmatprep.subr.bf16.mxu0 %v783_v0  ;;  %698 = vmatprep.subr.bf16.mxu1 %v783_v0 }
  0x89   : > { %v238_v19 = vpop.permute.xlu1 %237 }
  0x8a   : > { %v243_v25 = vsel %vm121_vm1, %v238_v19, 0 }
  0x8e   : > { %689 = vmatmul.mubr.msk.bf16.vlgmr.msra.gmra.mrb[0].mxu0 %vm121_vm1, %v115_v5 }
  0x8f   : > { %706 = vmatprep.mubr.msk.bf16.mxu0 %vm784_vm0, %v783_v0 }
 0x161   : > { %v162_v6 = vpop.f32.mrb[0].mxu0 }
 0x162   : > { %v690_v7 = vpop.f32.mrb[1].mxu0  ;;  %v168_v8 = vsel %vm121_vm1, %v162_v6, -inf }
 0x163   : > { %169 = vmax.xlane.f32.xlu0 %v168_v8  ;;  %v165_v9 = vpop.f32.mrb[2].mxu0 }
 0x164   : > { %v691_v10 = vpop.f32.mrb[3].mxu0 }
 0x179   : > { %475 = vrot.lane.b32.xlu0 %v831_v2, %s788_s15 }
 0x1f0   : > { %v170_v13 = vpop.xlane.xlu0 %169 }
 0x1f1   : > { %v171_v14 = vsub.f32 %v162_v6, %v170_v13 }
 0x1f3   : > { %v172_v15 = vmul.f32 1.442695, %v171_v14 }
 0x1f4   : > { %v476_v28 = vpop.permute.xlu0 %475 }
 0x1f5   : > { %759 = vpow2.f32 %v172_v15  ;;  %v481_v30 = vsel %vm121_vm1, %v476_v28, 0 }
 0x1ff   : > { %v760_v16 = vpop.eup %759 }
 0x200   : > { %v174_v17 = vsel %vm121_vm1, %v760_v16, 0.0 }
 0x201   : > { %175 = vadd.xlane.f32.xlu1 %v174_v17 }
 0x212   : > { %235 = vrot.lane.b32.xlu1 %v655_v18, %s789_s16 }
 0x216   : > { %356 = vrot.lane.b32.xlu1 %v831_v2, %s790_s17 }
 0x21a   : > { %354 = vrot.lane.b32.xlu1 %v655_v18, %s791_s18 }
 0x21e   : > { %473 = vrot.lane.b32.xlu1 %v655_v18, %s792_s19 }
 0x28e   : > { %v176_v20 = vpop.xlane.xlu1 %175 }
 0x28f   : > { %761 = vrcp.f32 %v176_v20 }
 0x292   : > { %v236_v23 = vpop.permute.xlu1 %235 }
 0x296   : > { %v357_v26 = vpop.permute.xlu1 %356 }
 0x297   : > { %v362_v27 = vsel %vm121_vm1, %v357_v26, 0 }
 0x299   : > { %v762_v21 = vpop.eup %761 }
 0x29a   : > { %v178_v22 = vmul.f32 %v762_v21, %v760_v16  ;;  %v355_v29 = vpop.permute.xlu1 %354 }
 0x29c   : > { %v179_v24 = vpack.c.bf16 %v178_v22, %v178_v22 }
 0x29e   : > { %695 = vmatmul.mubr.msk.bf16.vlgmr.msra.gmra.mrb[0].mxu1 %vm121_vm1, %v179_v24  ;;  %v474_v31 = vpop.permute.xlu1 %473 }
 0x29f   : > { %699 = vmatpush3.bf16.xpose.msra.mxu1 %v243_v25  ;;  %700 = vmatprep.mubr.msk.bf16.mxu1 %vm784_vm0, %v783_v0 }
 0x2a0   : > { %710 = vmatprep.subr.bf16.mxu1 %v783_v0 }
 0x2a6   : > { %701 = vmatmul.mubr.msk.bf16.vlgmr.msra.gmra.mrb[4].mxu1 %vm121_vm1, %v236_v23 }
 0x2a7   : > { %711 = vmatpush3.bf16.xpose.msra.mxu1 %v362_v27  ;;  %712 = vmatprep.mubr.msk.bf16.mxu1 %vm784_vm0, %v783_v0 }
 0x2a8   : > { %722 = vmatprep.subr.bf16.mxu1 %v783_v0 }
 0x2ae   : > { %713 = vmatmul.mubr.msk.bf16.vlgmr.msra.gmra.mrb[8].mxu1 %vm121_vm1, %v355_v29 }
 0x2af   : > { %723 = vmatpush3.bf16.xpose.msra.mxu1 %v481_v30  ;;  %724 = vmatprep.mubr.msk.bf16.mxu1 %vm784_vm0, %v783_v0 }
 0x2b6   : > { %725 = vmatmul.mubr.msk.bf16.vlgmr.msra.gmra.mrb[12].mxu1 %vm121_vm1, %v474_v31 }
 0x371   : > { %v223_v32 = vpop.f32.mrb[0].mxu1 }
 0x372   : > { %v229_v33 = vpack.c.bf16 %v223_v32, %v223_v32  ;;  %v696_v34 = vpop.f32.mrb[1].mxu1 }
 0x373   : > { %v226_v35 = vpop.f32.mrb[2].mxu1 }
 0x374   : > { %231 = vst.msk [vmem:[%s867_s22] sm:$0xf] %vm230_vm3, %v229_v33  ;;  %v697_v36 = vpop.f32.mrb[3].mxu1 }
 0x379   : > { %v279_v37 = vpop.f32.mrb[4].mxu1 }
 0x37a   : > { %v702_v38 = vpop.f32.mrb[5].mxu1  ;;  %v285_v39 = vsel %vm121_vm1, %v279_v37, -inf }
 0x37b   : > { %286 = vmax.xlane.f32.xlu1 %v285_v39  ;;  %v282_v40 = vpop.f32.mrb[6].mxu1 }
 0x37c   : > { %v703_v41 = vpop.f32.mrb[7].mxu1 }
 0x381   : > { %v398_v42 = vpop.f32.mrb[8].mxu1 }
 0x382   : > { %v404_v43 = vsel %vm121_vm1, %v398_v42, -inf  ;;  %v714_v44 = vpop.f32.mrb[9].mxu1 }
 0x383   : > { %405 = vmax.xlane.f32.xlu0 %v404_v43  ;;  %v401_v45 = vpop.f32.mrb[10].mxu1 }
 0x384   : > { %v715_v46 = vpop.f32.mrb[11].mxu1 }
 0x389   : > { %v517_v47 = vpop.f32.mrb[12].mxu1 }
 0x38a   : > { %v523_v48 = vsel %vm121_vm1, %v517_v47, -inf  ;;  %v726_v49 = vpop.f32.mrb[13].mxu1 }
 0x38b   : > { %524 = vmax.xlane.f32.xlu1 %v523_v48  ;;  %v520_v50 = vpop.f32.mrb[14].mxu1 }
 0x38c   : > { %v727_v51 = vpop.f32.mrb[15].mxu1 }
 0x408   : > { %v287_v52 = vpop.xlane.xlu1 %286 }
 0x409   : > { %v288_v53 = vsub.f32 %v279_v37, %v287_v52 }
 0x40b   : > { %v289_v54 = vmul.f32 1.442695, %v288_v53 }
 0x40d   : > { %763 = vpow2.f32 %v289_v54 }
 0x410   : > { %v406_v62 = vpop.xlane.xlu0 %405 }
 0x411   : > { %v407_v63 = vsub.f32 %v398_v42, %v406_v62 }
 0x413   : > { %v408_v1 = vmul.f32 1.442695, %v407_v63 }
 0x417   : > { %v764_v55 = vpop.eup %763 }
 0x418   : > { %v525_v56 = vpop.xlane.xlu1 %524  ;;  %v291_v57 = vsel %vm121_vm1, %v764_v55, 0.0 }
 0x419   : > { %v526_v58 = vsub.f32 %v517_v47, %v525_v56  ;;  %292 = vadd.xlane.f32.xlu1 %v291_v57 }
 0x41b   : > { %v527_v59 = vmul.f32 1.442695, %v526_v58 }
 0x41d   : > { %765 = vpow2.f32 %v527_v59 }
 0x41e   : > { %767 = vpow2.f32 %v408_v1 }
 0x427   : > { %v766_v60 = vpop.eup %765 }
 0x428   : > { %v529_v61 = vsel %vm121_vm1, %v766_v60, 0.0  ;;  %v768_v3 = vpop.eup %767 }
 0x429   : > { %530 = vadd.xlane.f32.xlu0 %v529_v61  ;;  %v410_v4 = vsel %vm121_vm1, %v768_v3, 0.0 }
 0x42a   : > { %297 = vrot.lane.b32.xlu1 %v831_v2, %s793_s23 }
 0x43f   : > { %416 = vrot.lane.b32.xlu0 %v831_v2, %s794_s24 }
 0x44e   : > { %411 = vadd.xlane.f32.xlu1 %v410_v4 }
 0x45f   : > { %535 = vrot.lane.b32.xlu1 %v831_v2, %s795_s25 }
 0x4a6   : > { %v293_v5 = vpop.xlane.xlu1 %292 }
 0x4a7   : > { %769 = vrcp.f32 %v293_v5 }
 0x4aa   : > { %v298_v6 = vpop.permute.xlu1 %297 }
 0x4ab   : > { %v303_v7 = vsel %vm185_vm2, %v298_v6, 0 }
 0x4ac   : > { %705 = vmatpush3.bf16.msra.mxu0 %v303_v7 }
 0x4ad   : > { %716 = vmatprep.subr.bf16.mxu0 %v783_v0 }
 0x4b1   : > { %v770_v8 = vpop.eup %769 }
 0x4b2   : > { %v295_v9 = vmul.f32 %v770_v8, %v764_v55 }
 0x4b4   : > { %v296_v10 = vpack.c.bf16 %v295_v9, %v295_v9 }
 0x4b6   : > { %707 = vmatmul.mubr.msk.bf16.vlgmr.msra.gmra.mrb[4].mxu0 %vm121_vm1, %v296_v10  ;;  %v531_v11 = vpop.xlane.xlu0 %530 }
 0x4b7   : > { %718 = vmatprep.mubr.msk.bf16.mxu0 %vm784_vm0, %v783_v0 }
 0x4ba   : > { %v417_v12 = vpop.permute.xlu0 %416 }
 0x4bb   : > { %v422_v2 = vsel %vm185_vm2, %v417_v12, 0 }
 0x4bc   : > { %717 = vmatpush3.bf16.msra.mxu0 %v422_v2 }
 0x4bd   : > { %728 = vmatprep.subr.bf16.mxu0 %v783_v0 }
 0x4db   : > { %v412_v13 = vpop.xlane.xlu1 %411 }
 0x4dc   : > { %771 = vrcp.f32 %v412_v13 }
 0x4dd   : > { %773 = vrcp.f32 %v531_v11 }
 0x4df   : > { %v536_v15 = vpop.permute.xlu1 %535 }
 0x4e0   : > { %v541_v17 = vsel %vm185_vm2, %v536_v15, 0 }
 0x4e6   : > { %v772_v14 = vpop.eup %771 }
 0x4e7   : > { %v414_v16 = vmul.f32 %v772_v14, %v768_v3  ;;  %v774_v19 = vpop.eup %773 }
 0x4e8   : > { %v533_v20 = vmul.f32 %v774_v19, %v766_v60 }
 0x4e9   : > { %v415_v18 = vpack.c.bf16 %v414_v16, %v414_v16 }
 0x4ea   : > { %v534_v21 = vpack.c.bf16 %v533_v20, %v533_v20 }
 0x4eb   : > { %719 = vmatmul.mubr.msk.bf16.vlgmr.msra.gmra.mrb[8].mxu0 %vm121_vm1, %v415_v18 }
 0x4ec   : > { %729 = vmatpush3.bf16.msra.mxu0 %v541_v17  ;;  %730 = vmatprep.mubr.msk.bf16.mxu0 %vm784_vm0, %v783_v0 }
 0x4f3   : > { %731 = vmatmul.mubr.msk.bf16.vlgmr.msra.gmra.mrb[12].mxu0 %vm121_vm1, %v534_v21 }
 0x589   : > { %v339_v22 = vpop.f32.mrb[4].mxu0 }
 0x58a   : > { %v667_v23 = vpack.c.bf16 %v339_v22, %v339_v22  ;;  %v708_v24 = vpop.f32.mrb[5].mxu0 }
 0x58b   : > { %v342_v25 = vpop.f32.mrb[6].mxu0 }
 0x58c   : > { %349 = vrot.lane.b32.xlu1 %v667_v23, %s796_s26  ;;  %v709_v26 = vpop.f32.mrb[7].mxu0 }
 0x5be   : > { %v458_v27 = vpop.f32.mrb[8].mxu0 }
 0x5bf   : > { %v668_v28 = vpack.c.bf16 %v458_v27, %v458_v27  ;;  %v720_v29 = vpop.f32.mrb[9].mxu0 }
 0x5c0   : > { %v461_v30 = vpop.f32.mrb[10].mxu0 }
 0x5c1   : > { %468 = vrot.lane.b32.xlu0 %v668_v28, %s797_s27  ;;  %v721_v0 = vpop.f32.mrb[11].mxu0 }
 0x5c6   : > { %v577_v31 = vpop.f32.mrb[12].mxu0 }
 0x5c7   : > { %v669_v32 = vpack.c.bf16 %v577_v31, %v577_v31  ;;  %v732_v33 = vpop.f32.mrb[13].mxu0 }
 0x5c8   : > { %v580_v34 = vpop.f32.mrb[14].mxu0 }
 0x5c9   : > { %587 = vrot.lane.b32.xlu1 %v669_v32, %s798_s28  ;;  %v733_v35 = vpop.f32.mrb[15].mxu0 }
 0x5fe   : > { %v350_v36 = vpop.permute.xlu1 %349 }
 0x5ff   : > { %353 = vst.msk [vmem:[%s867_s22] sm:$0xf] %vm352_vm4, %v350_v36 }
 0x633   : > { %v469_v37 = vpop.permute.xlu0 %468 }
 0x634   : > { %472 = vst.msk [vmem:[%s867_s22] sm:$0xf] %vm471_vm5, %v469_v37 }
 0x63b   : > { %v588_v38 = vpop.permute.xlu1 %587 }
 0x63c   : > { %591 = vst.msk [vmem:[%s867_s22] sm:$0xf] %vm590_vm6, %v588_v38 }
 0x63d PF: > { %s11_s6 = sadd.s32 1, %s781_s6  }
 0x63e   : > { %p8_p4 = scmp.ge.s32.totalorder %s11_s6, 4  }
 0x640   :  { %10 = sbr.rel (!%p8_p4) target bundleno = 1 (0x1), region = 54 }

// kernel: transformer_forward.30
= control target key start
LH: loop header
LB: loop body
LE: loop exit
PB: predicated region body
PF: predicated region fallthrough
CT: control target
= control target key end

     0   :  { %v290_v0 = vmov 0.0   ;;  %vm291_vm0 = vmmov 0   ;;  %vm53_vm1 = vcmask 261120   ;;  %vm140_vm2 = vcmask 523264   ;;  %s381_s1 = inlined_call_operand.vmem [shape: bf16[32,64], index: 1, kind: input, shape index: {}]   ;;  %s382_s0 = inlined_call_operand.vmem [shape: f32[16,32], index: 0, kind: input, shape index: {}]   ;;  %s383_s3 = inlined_call_operand.vmem [shape: bf16[64,32], index: 3, kind: input, shape index: {}]   ;;  %s384_s2 = inlined_call_operand.vmem [shape: f32[1,64], index: 2, kind: input, shape index: {}]   ;;  %s385_s4 = inlined_call_operand.vmem [shape: f32[1,32], index: 4, kind: input, shape index: {}]   ;;  %s386_s5 = inlined_call_operand.vmem [shape: f32[1,32], index: 5, kind: input, shape index: {}]   ;;  %s387_s6 = inlined_call_operand.vmem [shape: f32[1,32], index: 6, kind: input, shape index: {}]   ;;  %s388_s7 = inlined_call_operand.vmem [shape: f32[16,32], index: 7, kind: output, shape index: {}]  }
   0x1   :  { %258 = vmatprep.subr.bf16.mxu0 %v290_v0  ;;  %v280_v1 = vld [vmem:[%s381_s1] sm:$0xff]   ;;  %262 = vmatprep.mubr.msk.bf16.mxu0 %vm291_vm0, %v290_v0  ;;  %v281_v2 = vld [vmem:[%s381_s1 + $0x8] sm:$0xff]   ;;  %v284_v8 = vld [vmem:[%s383_s3 + $0x10] sm:$0xff]  }
   0x2   :  { %266 = vmatprep.subr.bf16.mxu1 %v290_v0  ;;  %274 = vmatprep.mubr.msk.bf16.mxu1 %vm291_vm0, %v290_v0  ;;  %v27_v3 = vld [vmem:[%s382_s0] sm:$0xff]  ;;  %v28_v4 = vld [vmem:[%s382_s0 + $0x8] sm:$0xff]  ;;  %v285_v9 = vld [vmem:[%s383_s3 + $0x18] sm:$0xff]  }
   0x3   :  { %259 = vmatpush3.bf16.msra.mxu0 %v280_v1  ;;  %v282_v5 = vld [vmem:[%s383_s3] sm:$0xff]   ;;  %v283_v6 = vld [vmem:[%s383_s3 + $0x8] sm:$0xff]   ;;  %v29_v7 = vpack.c.bf16 %v28_v4, %v27_v3 }
   0x4   :  { %260 = vmatprep.subr.bf16.mxu0 %v290_v0  ;;  %267 = vmatpush3.bf16.msra.mxu1 %v282_v5  ;;  %v238_v10 = vld [vmem:[%s384_s2] ss:$0 sm:$0xff] }
   0x5   :  { %268 = vmatprep.subr.bf16.mxu1 %v290_v0  ;;  %v242_v20 = vld [vmem:[%s385_s4] ss:$0 sm:$0xff] }
   0x6   :  { %v248_v48 = vld [vmem:[%s386_s5] ss:$0 sm:$0xff] }
   0x7   :  { %261 = vmatpush3.bf16.msra.mxu0 %v281_v2  ;;  %v249_v50 = vld [vmem:[%s387_s6] ss:$0 sm:$0xff] }
   0x8   :  { %269 = vmatpush3.bf16.msra.mxu1 %v283_v6 }
   0x9   :  { %270 = vmatprep.subr.bf16.mxu1 %v290_v0 }
   0xa   :  { %263 = vmatmul.mubr.msk.bf16.vlgmr.msra.gmra.mrb[0].mxu0 %vm53_vm1, %v29_v7 }
   0xc   :  { %271 = vmatpush3.bf16.msra.mxu1 %v284_v8 }
   0xd   :  { %272 = vmatprep.subr.bf16.mxu1 %v290_v0 }
  0x10   :  { %273 = vmatpush3.bf16.msra.mxu1 %v285_v9 }
  0xdd   :  { %v91_v11 = vpop.f32.mrb[0].mxu0 }
  0xde   :  { %v92_v12 = vadd.f32 %v238_v10, %v91_v11  ;;  %v264_v13 = vpop.f32.mrb[1].mxu0 }
  0xdf   :  { %v94_v14 = vpop.f32.mrb[2].mxu0 }
  0xe0   :  { %v95_v15 = vadd.f32 %v238_v10, %v94_v14  ;;  %v265_v16 = vpop.f32.mrb[3].mxu0  ;;  %v98_v17 = vmax.f32 %v92_v12, 0.0 }
  0xe2   :  { %v99_v18 = vmax.f32 %v95_v15, 0.0 }
  0xe4   :  { %v100_v19 = vpack.c.bf16 %v99_v18, %v98_v17 }
  0xe6   :  { %275 = vmatmul.mubr.msk.bf16.vlgmr.msra.gmra.mrb[0].mxu1 %vm140_vm2, %v100_v19 }
 0x1b9   :  { %v178_v21 = vpop.f32.mrb[0].mxu1 }
 0x1ba   :  { %v179_v22 = vadd.f32 %v242_v20, %v178_v21  ;;  %v276_v23 = vpop.f32.mrb[1].mxu1 }
 0x1bb   :  { %v181_v24 = vpop.f32.mrb[2].mxu1 }
 0x1bc   :  { %v182_v25 = vadd.f32 %v242_v20, %v181_v24  ;;  %v277_v26 = vpop.f32.mrb[3].mxu1  ;;  %v185_v27 = vadd.f32 %v179_v22, %v27_v3 }
 0x1be   :  { %v189_v28 = vsel %vm53_vm1, %v185_v27, 0.0  ;;  %v186_v29 = vadd.f32 %v182_v25, %v28_v4 }
 0x1bf   :  { %190 = vadd.xlane.f32.xlu0 %v189_v28 }
 0x1c0   :  { %v192_v30 = vsel %vm53_vm1, %v186_v29, 0.0 }
 0x1c3   :  { %193 = vadd.xlane.f32.xlu0 %v192_v30 }
 0x24c   :  { %v191_v31 = vpop.xlane.xlu0 %190 }
 0x24d   :  { %v196_v32 = vmul.f32 0.03125, %v191_v31 }
 0x24f   :  { %v198_v33 = vsub.f32 %v185_v27, %v196_v32 }
 0x250   :  { %v194_v34 = vpop.xlane.xlu0 %193 }
 0x251   :  { %v197_v35 = vmul.f32 0.03125, %v194_v34  ;;  %v200_v36 = vmul.f32 %v198_v33, %v198_v33 }
 0x253   :  { %v199_v37 = vsub.f32 %v186_v29, %v197_v35  ;;  %v202_v38 = vsel %vm53_vm1, %v200_v36, 0.0 }
 0x254   :  { %203 = vadd.xlane.f32.xlu1 %v202_v38 }
 0x255   :  { %v201_v39 = vmul.f32 %v199_v37, %v199_v37 }
 0x257   :  { %v205_v40 = vsel %vm53_vm1, %v201_v39, 0.0 }
 0x258   :  { %206 = vadd.xlane.f32.xlu1 %v205_v40 }
 0x2e1   :  { %v204_v41 = vpop.xlane.xlu1 %203 }
 0x2e2   :  { %v208_v42 = vmul.f32 0.03125, %v204_v41 }
 0x2e4   :  { %v210_v43 = vadd.f32 1e-05, %v208_v42 }
 0x2e5   :  { %v207_v44 = vpop.xlane.xlu1 %206 }
 0x2e6   :  { %286 = vrsqrt.f32 %v210_v43  ;;  %v209_v45 = vmul.f32 0.03125, %v207_v44 }
 0x2e8   :  { %v211_v46 = vadd.f32 1e-05, %v209_v45 }
 0x2ea   :  { %288 = vrsqrt.f32 %v211_v46 }
 0x2f0   :  { %v287_v47 = vpop.eup %286 }
 0x2f1   :  { %v214_v49 = vmul.f32 %v287_v47, %v198_v33 }
 0x2f3   :  { %v222_v51 = vmul.f32 %v248_v48, %v214_v49 }
 0x2f4   :  { %v289_v52 = vpop.eup %288 }
 0x2f5   :  { %v230_v53 = vadd.f32 %v249_v50, %v222_v51  ;;  %v215_v54 = vmul.f32 %v289_v52, %v199_v37 }
 0x2f7   :  { %232 = vst.msk [vmem:[%s388_s7] sm:$0xff] %vm53_vm1, %v230_v53  ;;  %v223_v55 = vmul.f32 %v248_v48, %v215_v54 }
 0x2f9   :  { %v231_v56 = vadd.f32 %v249_v50, %v223_v55 }
 0x2fb   :  { %233 = vst.msk [vmem:[%s388_s7 + $0x8] sm:$0xff] %vm53_vm1, %v231_v56 }

// kernel: transformer_forward.35
= control target key start
LH: loop header
LB: loop body
LE: loop exit
PB: predicated region body
PF: predicated region fallthrough
CT: control target
= control target key end

     0   :  { %vm18_vm0 = vcmask 261120   ;;  %s118_s0 = inlined_call_operand.vmem [shape: f32[16,32], index: 0, kind: input, shape index: {}]   ;;  %s119_s1 = inlined_call_operand.vmem [shape: f32[1,32], index: 1, kind: input, shape index: {}]   ;;  %s120_s2 = inlined_call_operand.vmem [shape: f32[1,32], index: 2, kind: input, shape index: {}]   ;;  %s121_s3 = inlined_call_operand.vmem [shape: f32[16,32], index: 3, kind: output, shape index: {}]  }
   0x1   :  { %v14_v0 = vld [vmem:[%s118_s0] sm:$0xff]  ;;  %v15_v1 = vld [vmem:[%s118_s0 + $0x8] sm:$0xff] }
   0x2   :  { %v19_v2 = vsel %vm18_vm0, %v14_v0, 0.0  ;;  %v22_v3 = vsel %vm18_vm0, %v15_v1, 0.0  ;;  %v68_v21 = vld [vmem:[%s119_s1] ss:$0 sm:$0xff] }
   0x3   :  { %20 = vadd.xlane.f32.xlu0 %v19_v2  ;;  %v69_v23 = vld [vmem:[%s120_s2] ss:$0 sm:$0xff] }
   0x7   :  { %23 = vadd.xlane.f32.xlu0 %v22_v3 }
  0x90   :  { %v21_v4 = vpop.xlane.xlu0 %20 }
  0x91   :  { %v26_v5 = vmul.f32 0.03125, %v21_v4 }
  0x93   :  { %v28_v6 = vsub.f32 %v14_v0, %v26_v5 }
  0x94   :  { %v24_v7 = vpop.xlane.xlu0 %23 }
  0x95   :  { %v27_v8 = vmul.f32 0.03125, %v24_v7  ;;  %v30_v9 = vmul.f32 %v28_v6, %v28_v6 }
  0x97   :  { %v29_v10 = vsub.f32 %v15_v1, %v27_v8  ;;  %v32_v11 = vsel %vm18_vm0, %v30_v9, 0.0 }
  0x98   :  { %33 = vadd.xlane.f32.xlu1 %v32_v11 }
  0x99   :  { %v31_v12 = vmul.f32 %v29_v10, %v29_v10 }
  0x9b   :  { %v35_v13 = vsel %vm18_vm0, %v31_v12, 0.0 }
  0x9c   :  { %36 = vadd.xlane.f32.xlu1 %v35_v13 }
 0x125   :  { %v34_v14 = vpop.xlane.xlu1 %33 }
 0x126   :  { %v38_v15 = vmul.f32 0.03125, %v34_v14 }
 0x128   :  { %v40_v16 = vadd.f32 1e-05, %v38_v15 }
 0x129   :  { %v37_v17 = vpop.xlane.xlu1 %36 }
 0x12a   :  { %70 = vrsqrt.f32 %v40_v16  ;;  %v39_v18 = vmul.f32 0.03125, %v37_v17 }
 0x12c   :  { %v41_v19 = vadd.f32 1e-05, %v39_v18 }
 0x12e   :  { %72 = vrsqrt.f32 %v41_v19 }
 0x134   :  { %v71_v20 = vpop.eup %70 }
 0x135   :  { %v44_v22 = vmul.f32 %v71_v20, %v28_v6 }
 0x137   :  { %v52_v24 = vmul.f32 %v68_v21, %v44_v22 }
 0x138   :  { %v73_v25 = vpop.eup %72 }
 0x139   :  { %v60_v26 = vadd.f32 %v69_v23, %v52_v24  ;;  %v45_v27 = vmul.f32 %v73_v25, %v29_v10 }
 0x13b   :  { %62 = vst.msk [vmem:[%s121_s3] sm:$0xff] %vm18_vm0, %v60_v26  ;;  %v53_v28 = vmul.f32 %v68_v21, %v45_v27 }
 0x13d   :  { %v61_v29 = vadd.f32 %v69_v23, %v53_v28 }
 0x13f   :  { %63 = vst.msk [vmem:[%s121_s3 + $0x8] sm:$0xff] %vm18_vm0, %v61_v29 }

// kernel: transformer_forward.40
= control target key start
LH: loop header
LB: loop body
LE: loop exit
PB: predicated region body
PF: predicated region fallthrough
CT: control target
= control target key end

     0   :  { %vm19_vm0 = vcmask 523264   ;;  %v145_v0 = vmov 0.0   ;;  %vm146_vm1 = vmmov 0   ;;  %vm43_vm2 = vcmask 261120   ;;  %s192_s1 = inlined_call_operand.vmem [shape: bf16[32,64], index: 1, kind: input, shape index: {}]   ;;  %s193_s0 = inlined_call_operand.vmem [shape: f32[16,32], index: 0, kind: input, shape index: {}]   ;;  %s194_s2 = inlined_call_operand.vmem [shape: f32[1,64], index: 2, kind: input, shape index: {}]   ;;  %s195_s3 = inlined_call_operand.vmem [shape: bf16[16,64], index: 3, kind: output, shape index: {}]  }
   0x1   :  { %133 = vmatprep.subr.bf16.mxu0 %v145_v0  ;;  %v143_v1 = vld [vmem:[%s192_s1] sm:$0xff]   ;;  %137 = vmatprep.mubr.msk.bf16.mxu0 %vm146_vm1, %v145_v0  ;;  %20 = vst.msk [vmem:[#allocation2] sm:$0xff] %vm19_vm0, %v145_v0  ;;  %21 = vst.msk [vmem:[#allocation2 + $0x8] sm:$0xff] %vm19_vm0, %v145_v0  ;;  %v144_v2 = vld [vmem:[%s192_s1 + $0x8] sm:$0xff]   ;;  %vm115_vm3 = vcmask 519168  }
   0x2   :  { %134 = vmatpush3.bf16.msra.mxu0 %v143_v1  ;;  %v24_v3 = vld [vmem:[%s193_s0] sm:$0xff]  ;;  %v25_v4 = vld [vmem:[%s193_s0 + $0x8] sm:$0xff] }
   0x3   :  { %135 = vmatprep.subr.bf16.mxu0 %v145_v0  ;;  %v26_v5 = vpack.c.bf16 %v25_v4, %v24_v3  ;;  %v125_v14 = vld [vmem:[%s194_s2] ss:$0 sm:$0xff] }
   0x6   :  { %136 = vmatpush3.bf16.msra.mxu0 %v144_v2 }
   0x8   :  { %v22_v6 = vld [vmem:[#allocation2] sm:$0xff]  ;;  %v23_v8 = vld [vmem:[#allocation2 + $0x8] sm:$0xff] }
   0x9   :  { %138 = vmatmul.mubr.msk.bf16.vlgmr.msra.gmra.mrb[0].mxu0 %vm43_vm2, %v26_v5 }
  0xdc   :  { %v81_v7 = vpop.f32.mrb[0].mxu0 }
  0xdd   :  { %v88_v9 = vadd.f32 %v81_v7, %v22_v6  ;;  %v139_v10 = vpop.f32.mrb[1].mxu0 }
  0xde   :  { %v84_v11 = vpop.f32.mrb[2].mxu0 }
  0xdf   :  { %91 = vst.msk [vmem:[#allocation2] sm:$0xff] %vm19_vm0, %v88_v9  ;;  %v89_v12 = vadd.f32 %v84_v11, %v23_v8  ;;  %v140_v13 = vpop.f32.mrb[3].mxu0 }
  0xe1   :  { %92 = vst.msk [vmem:[#allocation2 + $0x8] sm:$0xff] %vm19_vm0, %v89_v12 }
  0xe6   :  { %v96_v15 = vld [vmem:[#allocation2] sm:$0xff] }
  0xe7   :  { %v105_v16 = vadd.f32 %v125_v14, %v96_v15 }
  0xe8   :  { %v97_v17 = vld [vmem:[#allocation2 + $0x8] sm:$0xff] }
  0xe9   :  { %v128_v18 = vpack.c.bf16 %v105_v16, %v105_v16  ;;  %v106_v19 = vadd.f32 %v125_v14, %v97_v17 }
  0xeb   :  { %116 = vst.msk [vmem:[%s195_s3] sm:$0xf] %vm115_vm3, %v128_v18  ;;  %v129_v20 = vpack.c.bf16 %v106_v19, %v106_v19 }
  0xed   :  { %117 = vst.msk [vmem:[%s195_s3 + $0x4] sm:$0xf] %vm115_vm3, %v129_v20 }

// kernel: transformer_forward.53
= control target key start
LH: loop header
LB: loop body
LE: loop exit
PB: predicated region body
PF: predicated region fallthrough
CT: control target
= control target key end

     0   :  { %v172_v1 = vmov 0.0   ;;  %vm173_vm0 = vmmov 0   ;;  %vm20_vm1 = vcmask 457728   ;;  %s230_s0 = inlined_call_operand.vmem [shape: f32[16,32], index: 0, kind: input, shape index: {}]   ;;  %s231_s1 = inlined_call_operand.vmem [shape: bf16[32,56], index: 1, kind: input, shape index: {}]   ;;  %s232_s2 = inlined_call_operand.vmem [shape: f32[1,56], index: 2, kind: input, shape index: {}]   ;;  %s233_s3 = inlined_call_operand.hbm [shape: f32[16,56], index: 3, kind: output, shape index: {}]  }
   0x1   :  { %v146_v0 = vld [vmem:[%s231_s1] sm:$0xff]   ;;  %133 = vmatprep.subr.bf16.mxu0 %v172_v1  ;;  %v147_v2 = vld [vmem:[%s231_s1 + $0x8] sm:$0xff]   ;;  %137 = vmatprep.mubr.msk.bf16.mxu0 %vm173_vm0, %v172_v1 }
   0x2   :  { %134 = vmatpush3.bf16.msra.mxu0 %v146_v0  ;;  %v25_v3 = vld [vmem:[%s230_s0] sm:$0xff]  ;;  %v26_v4 = vld [vmem:[%s230_s0 + $0x8] sm:$0xff] }
   0x3   :  { %8 = vsyncpa [#allocation4], 0  ;;  %135 = vmatprep.subr.bf16.mxu0 %v172_v1  ;;  %21 = vst.msk [vmem:[#allocation2] sm:$0xff] %vm20_vm1, %v172_v1  ;;  %v27_v5 = vpack.c.bf16 %v26_v4, %v25_v3  ;;  %vm44_vm2 = vcmask 261120   ;;  %v129_v14 = vld [vmem:[%s232_s2] ss:$0 sm:$0xff] }
   0x4   :  { %22 = vst.msk [vmem:[#allocation2 + $0x8] sm:$0xff] %vm20_vm1, %v172_v1  ;;  %s174_s20 = smov [#allocation3]  }
   0x5   :  { %s115_s21 = sshll.u32 %s174_s20, 4  ;;  %s116_s21 = int_to_ptr.vmem [resolvable:$true] %s115_s21 }
   0x6   :  { %136 = vmatpush3.bf16.msra.mxu0 %v147_v2  ;;  %s148_s22 = scalar_lea.vmem %s116_s21, 256  ;;  %p153_p1 = scmp.lt.s32.totalorder %s116_s21, %s116_s21 }
   0x7   :  { %p149_p0 = scmp.ne.s32.totalorder %s116_s21, %s148_s22  ;;  %p154_p2 = scmp.lt.s32.totalorder %s148_s22, %s148_s22 }
   0x9   :  { %138 = vmatmul.mubr.msk.bf16.vlgmr.msra.gmra.mrb[0].mxu0 %vm44_vm2, %v27_v5  ;;  %p155_p3 = por %p154_p2, %p153_p1 }
   0xa   :  { %v23_v6 = vld [vmem:[#allocation2] sm:$0xff] }
   0xb   :  { %v24_v8 = vld [vmem:[#allocation2 + $0x8] sm:$0xff]  ;;  %p156_p4 = pnand %p155_p3, %p149_p0 }
  0xdc   :  { %v82_v7 = vpop.f32.mrb[0].mxu0 }
  0xdd   :  { %v89_v9 = vadd.f32 %v82_v7, %v23_v6  ;;  %v139_v10 = vpop.f32.mrb[1].mxu0 }
  0xde   :  { %v85_v11 = vpop.f32.mrb[2].mxu0 }
  0xdf   :  { %92 = vst.msk [vmem:[#allocation2] sm:$0xff] %vm20_vm1, %v89_v9  ;;  %v90_v12 = vadd.f32 %v85_v11, %v24_v8  ;;  %v140_v13 = vpop.f32.mrb[3].mxu0 }
  0xe1   :  { %93 = vst.msk [vmem:[#allocation2 + $0x8] sm:$0xff] %vm20_vm1, %v90_v12 }
  0xe6   :  { %v97_v15 = vld [vmem:[#allocation2] sm:$0xff] }
  0xe7   :  { %v106_v16 = vadd.f32 %v129_v14, %v97_v15 }
  0xe8   :  { %v98_v17 = vld [vmem:[#allocation2 + $0x8] sm:$0xff] }
  0xe9   :  { %v107_v18 = vadd.f32 %v129_v14, %v98_v17  ;;  %108 = vst.msk [vmem:[#allocation3] sm:$0xff] %vm20_vm1, %v106_v16 }
  0xeb   :  { %109 = vst.msk [vmem:[#allocation3 + $0x8] sm:$0xff] %vm20_vm1, %v107_v18 }
  0xec   :  { %159 = shalt.err (!%p156_p4)
}
  0xed   :  { %s160_s24 = scalar_lea.hbm %s233_s3, 256 }
  0xee   :  { %p161_p5 = scmp.ne.s32.totalorder %s233_s3, %s160_s24  ;;  %p164_p6 = scmp.lt.u32.totalorder %s160_s24, %s233_s3 }
  0xf0   :  { %p166_p7 = pnand %p164_p6, %p161_p5 }
  0xf2   :  { %169 = shalt.err (!%p166_p7)
}
  0xf3   :  { %s175_s29 = smov 128   ;;  %s176_s30 = smov 8  }
  0xf4   :  { %121 = dma.vmem_to_hbm [thread:$0]  %s116_s21, 256, %s233_s3, [#allocation4], %s175_s29, %s175_s29, %s176_s30  }
  0xf5   :  { %170 = dma.done.wait [#allocation4], 256  }
  0xf6   :  { %171 = vsyncadd [#allocation4], 4294967040 }
  0xf7   :  { %125 = vsyncpa [#allocation4], 1 }

// kernel: transformer_forward.39
= control target key start
LH: loop header
LB: loop body
LE: loop exit
PB: predicated region body
PF: predicated region fallthrough
CT: control target
= control target key end

     0   :  { %vm19_vm0 = vcmask 261120   ;;  %v144_v0 = vmov 0.0   ;;  %vm145_vm1 = vmmov 0   ;;  %vm114_vm2 = vcmask 257024   ;;  %s192_s1 = inlined_call_operand.vmem [shape: bf16[32,32], index: 1, kind: input, shape index: {}]   ;;  %s193_s0 = inlined_call_operand.vmem [shape: f32[16,32], index: 0, kind: input, shape index: {}]   ;;  %s194_s2 = inlined_call_operand.vmem [shape: f32[1,32], index: 2, kind: input, shape index: {}]   ;;  %s195_s3 = inlined_call_operand.vmem [shape: bf16[16,32], index: 3, kind: output, shape index: {}]  }
   0x1   :  { %132 = vmatprep.subr.bf16.mxu0 %v144_v0  ;;  %v142_v1 = vld [vmem:[%s192_s1] sm:$0xff]   ;;  %136 = vmatprep.mubr.msk.bf16.mxu0 %vm145_vm1, %v144_v0  ;;  %20 = vst.msk [vmem:[#allocation2] sm:$0xff] %vm19_vm0, %v144_v0  ;;  %21 = vst.msk [vmem:[#allocation2 + $0x8] sm:$0xff] %vm19_vm0, %v144_v0  ;;  %v143_v2 = vld [vmem:[%s192_s1 + $0x8] sm:$0xff]  }
   0x2   :  { %133 = vmatpush3.bf16.msra.mxu0 %v142_v1  ;;  %v24_v3 = vld [vmem:[%s193_s0] sm:$0xff]  ;;  %v25_v4 = vld [vmem:[%s193_s0 + $0x8] sm:$0xff] }
   0x3   :  { %134 = vmatprep.subr.bf16.mxu0 %v144_v0  ;;  %v26_v5 = vpack.c.bf16 %v25_v4, %v24_v3  ;;  %v124_v14 = vld [vmem:[%s194_s2] ss:$0 sm:$0xff] }
   0x6   :  { %135 = vmatpush3.bf16.msra.mxu0 %v143_v2 }
   0x8   :  { %v22_v6 = vld [vmem:[#allocation2] sm:$0xff]  ;;  %v23_v8 = vld [vmem:[#allocation2 + $0x8] sm:$0xff] }
   0x9   :  { %137 = vmatmul.mubr.msk.bf16.vlgmr.msra.gmra.mrb[0].mxu0 %vm19_vm0, %v26_v5 }
  0xdc   :  { %v81_v7 = vpop.f32.mrb[0].mxu0 }
  0xdd   :  { %v88_v9 = vadd.f32 %v81_v7, %v22_v6  ;;  %v138_v10 = vpop.f32.mrb[1].mxu0 }
  0xde   :  { %v84_v11 = vpop.f32.mrb[2].mxu0 }
  0xdf   :  { %90 = vst.msk [vmem:[#allocation2] sm:$0xff] %vm19_vm0, %v88_v9  ;;  %v89_v12 = vadd.f32 %v84_v11, %v23_v8  ;;  %v139_v13 = vpop.f32.mrb[3].mxu0 }
  0xe1   :  { %91 = vst.msk [vmem:[#allocation2 + $0x8] sm:$0xff] %vm19_vm0, %v89_v12 }
  0xe6   :  { %v95_v15 = vld [vmem:[#allocation2] sm:$0xff] }
  0xe7   :  { %v104_v16 = vadd.f32 %v124_v14, %v95_v15 }
  0xe8   :  { %v96_v17 = vld [vmem:[#allocation2 + $0x8] sm:$0xff] }
  0xe9   :  { %v127_v18 = vpack.c.bf16 %v104_v16, %v104_v16  ;;  %v105_v19 = vadd.f32 %v124_v14, %v96_v17 }
  0xeb   :  { %115 = vst.msk [vmem:[%s195_s3] sm:$0xf] %vm114_vm2, %v127_v18  ;;  %v128_v20 = vpack.c.bf16 %v105_v19, %v105_v19 }
  0xed   :  { %116 = vst.msk [vmem:[%s195_s3 + $0x4] sm:$0xf] %vm114_vm2, %v128_v20 }

// kernel: transformer_forward.41
= control target key start
LH: loop header
LB: loop body
LE: loop exit
PB: predicated region body
PF: predicated region fallthrough
CT: control target
= control target key end

     0   :  { %s862_s9 = smov 0   ;;  %s950_s0 = inlined_call_operand.vmem [shape: bf16[2,8,32], index: 0, kind: input, shape index: {}]   ;;  %s951_s1 = inlined_call_operand.vmem [shape: bf16[2,8,64], index: 1, kind: input, shape index: {}]   ;;  %s952_s2 = inlined_call_operand.vmem [shape: bf16[2,8,32], index: 2, kind: output, shape index: {}]  }
   0x1 LB: > { %s700_s10 = sadd.s32 4294967295, %s833_s9   ;;  %p704_p0 = scmp.ge.s32.totalorder %s833_s9, 1  ;;  %s833_s9 = sphi %s862_s9, %s12_s9  }
   0x2   : > { %p120_p1 = scmp.lt.s32.totalorder %s833_s9, 3 }
   0x4   : > { %p121_p2 = pnand %p704_p0, %p120_p1 }
   0x5   : > { %p144_p3 = scmp.lt.s32.totalorder (!%p121_p2), %s700_s10, 1  ;;  %v835_v0 = vmov (!%p121_p2), 0.0   ;;  %vm836_vm0 = vmmov (!%p121_p2), 0   ;;  %vm161_vm1 = vcmask (!%p121_p2), 64512   ;;  %s837_s18 = smov (!%p121_p2), 96   ;;  %vm228_vm2 = vcmask (!%p121_p2), 1043456  }
   0x6   : > { %124 = sbr.rel (%p121_p2) target bundleno = 1436 (0x59c), region = 28  ;;  %742 = vmatprep.subr.bf16.mxu0 (!%p121_p2), %v835_v0  ;;  %744 = vmatprep.mubr.msk.bf16.mxu0 (!%p121_p2), %vm836_vm0, %v835_v0  ;;  %s838_s19 = smov (!%p121_p2), 120   ;;  %vm273_vm3 = vcmask (!%p121_p2), 60416   ;;  %vm395_vm4 = vcmask (!%p121_p2), 126016   ;;  %vm514_vm5 = vcmask (!%p121_p2), 191616   ;;  %vm633_vm6 = vcmask (!%p121_p2), 257216  }
   0x7   : > { %748 = vmatprep.subr.bf16.mxu1 (!%p121_p2), %v835_v0  ;;  %750 = vmatprep.mubr.msk.bf16.mxu1 (!%p121_p2), %vm836_vm0, %v835_v0  ;;  %s839_s20 = smov (!%p121_p2), 112   ;;  %s840_s21 = smov (!%p121_p2), 104  }
   0x8   : > { %s841_s25 = smov (!%p121_p2), 88   ;;  %s842_s26 = smov (!%p121_p2), 72  }
   0x9   : > { %s843_s27 = smov (!%p121_p2), 80   ;;  %s844_s28 = smov (!%p121_p2), 8  }
   0xa   : > { %s845_s29 = smov (!%p121_p2), 16   ;;  %s846_s30 = smov (!%p121_p2), 24  }
   0xd   : > { %s954_s10 = smov (!%p144_p3, %s700_s10), 1 }
   0xe   : > { %s876_s11 = sshll.u32 %s954_s10, 2 }
   0xf   : > { %s147_s14 = scalar_lea.vmem %s950_s0, %s876_s11  ;;  %s151_s17 = scalar_lea.vmem %s951_s1, %s876_s11 }
  0x10   : > { %v159_v1 = vld [vmem:[%s151_s17] sm:$0xf]  ;;  %s920_s24 = scalar_lea.vmem %s952_s2, %s876_s11 }
  0x11   : > { %v166_v2 = vsel %vm161_vm1, %v159_v1, 0  ;;  %v158_v3 = vld [vmem:[%s147_s14] sm:$0xf]  ;;  %v892_v10 = vcombine.low %v159_v1, %v159_v1 }
  0x12   : > { %743 = vmatpush3.bf16.xpose.msra.mxu0 %v166_v2  ;;  %v160_v4 = vmul.bf16 1052065461, %v158_v3 }
  0x13   : > { %760 = vmatprep.subr.bf16.mxu0 %v835_v0  ;;  %223 = vrot.lane.b32.xlu1 %v892_v10, %s837_s18 }
  0x14   : > { %v711_v11 = vcombine.low %v160_v4, %v160_v4 }
  0x17   : > { %280 = vrot.lane.b32.xlu1 %v892_v10, %s838_s19 }
  0x19   : > { %745 = vmatmul.mubr.msk.bf16.vlgmr.msra.gmra.mrb[0].mxu0 %vm161_vm1, %v160_v4 }
  0x1a   : > { %762 = vmatprep.mubr.msk.bf16.mxu0 %vm836_vm0, %v835_v0 }
  0x1b   : > { %399 = vrot.lane.b32.xlu1 %v892_v10, %s839_s20 }
  0x1f   : > { %397 = vrot.lane.b32.xlu1 %v711_v11, %s839_s20 }
  0x23   : > { %518 = vrot.lane.b32.xlu1 %v892_v10, %s840_s21 }
  0x27   : > { %516 = vrot.lane.b32.xlu1 %v711_v11, %s840_s21 }
  0x85   : > { %v224_v17 = vpop.permute.xlu1 %223 }
  0x86   : > { %v230_v18 = vsel %vm228_vm2, %v224_v17, 0 }
  0x87   : > { %749 = vmatpush3.bf16.msra.mxu1 %v230_v18 }
  0x88   : > { %754 = vmatprep.subr.bf16.mxu1 %v835_v0 }
  0x89   : > { %v281_v21 = vpop.permute.xlu1 %280 }
  0x8a   : > { %v286_v23 = vsel %vm161_vm1, %v281_v21, 0 }
  0x8d   : > { %v400_v25 = vpop.permute.xlu1 %399 }
  0x8e   : > { %v405_v28 = vsel %vm161_vm1, %v400_v25, 0 }
  0x91   : > { %v398_v27 = vpop.permute.xlu1 %397 }
  0x95   : > { %v519_v29 = vpop.permute.xlu1 %518 }
  0x96   : > { %v524_v30 = vsel %vm161_vm1, %v519_v29, 0 }
  0x99   : > { %v517_v31 = vpop.permute.xlu1 %516 }
  0xec   : > { %v202_v5 = vpop.f32.mrb[0].mxu0 }
  0xed   : > { %v746_v6 = vpop.f32.mrb[1].mxu0  ;;  %v208_v7 = vsel %vm161_vm1, %v202_v5, -inf }
  0xee   : > { %209 = vmax.xlane.f32.xlu0 %v208_v7  ;;  %v205_v8 = vpop.f32.mrb[2].mxu0 }
  0xef   : > { %v747_v9 = vpop.f32.mrb[3].mxu0 }
 0x17b   : > { %v210_v12 = vpop.xlane.xlu0 %209 }
 0x17c   : > { %v211_v13 = vsub.f32 %v202_v5, %v210_v12 }
 0x17e   : > { %v212_v14 = vmul.f32 1.442695, %v211_v13 }
 0x180   : > { %811 = vpow2.f32 %v212_v14 }
 0x18a   : > { %v812_v15 = vpop.eup %811 }
 0x18b   : > { %v214_v16 = vsel %vm161_vm1, %v812_v15, 0.0 }
 0x18c   : > { %215 = vadd.xlane.f32.xlu0 %v214_v16 }
 0x1a2   : > { %278 = vrot.lane.b32.xlu0 %v711_v11, %s838_s19 }
 0x219   : > { %v216_v19 = vpop.xlane.xlu0 %215 }
 0x21a   : > { %813 = vrcp.f32 %v216_v19 }
 0x21d   : > { %v279_v26 = vpop.permute.xlu0 %278 }
 0x224   : > { %v814_v20 = vpop.eup %813 }
 0x225   : > { %v218_v22 = vmul.f32 %v814_v20, %v812_v15 }
 0x227   : > { %v219_v24 = vpack.c.bf16 %v218_v22, %v218_v22 }
 0x229   : > { %751 = vmatmul.mubr.msk.bf16.vlgmr.msra.gmra.mrb[0].mxu1 %vm161_vm1, %v219_v24 }
 0x22a   : > { %755 = vmatpush3.bf16.xpose.msra.mxu1 %v286_v23  ;;  %756 = vmatprep.mubr.msk.bf16.mxu1 %vm836_vm0, %v835_v0 }
 0x22b   : > { %766 = vmatprep.subr.bf16.mxu1 %v835_v0 }
 0x231   : > { %757 = vmatmul.mubr.msk.bf16.vlgmr.msra.gmra.mrb[4].mxu1 %vm161_vm1, %v279_v26 }
 0x232   : > { %767 = vmatpush3.bf16.xpose.msra.mxu1 %v405_v28  ;;  %768 = vmatprep.mubr.msk.bf16.mxu1 %vm836_vm0, %v835_v0 }
 0x233   : > { %778 = vmatprep.subr.bf16.mxu1 %v835_v0 }
 0x239   : > { %769 = vmatmul.mubr.msk.bf16.vlgmr.msra.gmra.mrb[8].mxu1 %vm161_vm1, %v398_v27 }
 0x23a   : > { %779 = vmatpush3.bf16.xpose.msra.mxu1 %v524_v30  ;;  %780 = vmatprep.mubr.msk.bf16.mxu1 %vm836_vm0, %v835_v0 }
 0x241   : > { %781 = vmatmul.mubr.msk.bf16.vlgmr.msra.gmra.mrb[12].mxu1 %vm161_vm1, %v517_v31 }
 0x2fc   : > { %v266_v32 = vpop.f32.mrb[0].mxu1 }
 0x2fd   : > { %v272_v33 = vpack.c.bf16 %v266_v32, %v266_v32  ;;  %v752_v34 = vpop.f32.mrb[1].mxu1 }
 0x2fe   : > { %v269_v35 = vpop.f32.mrb[2].mxu1 }
 0x2ff   : > { %274 = vst.msk [vmem:[%s920_s24] sm:$0xf] %vm273_vm3, %v272_v33  ;;  %v753_v36 = vpop.f32.mrb[3].mxu1 }
 0x304   : > { %v322_v37 = vpop.f32.mrb[4].mxu1 }
 0x305   : > { %v758_v38 = vpop.f32.mrb[5].mxu1  ;;  %v328_v39 = vsel %vm161_vm1, %v322_v37, -inf }
 0x306   : > { %329 = vmax.xlane.f32.xlu1 %v328_v39  ;;  %v325_v40 = vpop.f32.mrb[6].mxu1 }
 0x307   : > { %v759_v41 = vpop.f32.mrb[7].mxu1 }
 0x30c   : > { %v441_v42 = vpop.f32.mrb[8].mxu1 }
 0x30d   : > { %v770_v43 = vpop.f32.mrb[9].mxu1  ;;  %v447_v44 = vsel %vm161_vm1, %v441_v42, -inf }
 0x30e   : > { %448 = vmax.xlane.f32.xlu0 %v447_v44  ;;  %v444_v45 = vpop.f32.mrb[10].mxu1 }
 0x30f   : > { %v771_v46 = vpop.f32.mrb[11].mxu1 }
 0x314   : > { %v560_v47 = vpop.f32.mrb[12].mxu1 }
 0x315   : > { %v782_v48 = vpop.f32.mrb[13].mxu1  ;;  %v566_v49 = vsel %vm161_vm1, %v560_v47, -inf }
 0x316   : > { %567 = vmax.xlane.f32.xlu1 %v566_v49  ;;  %v563_v50 = vpop.f32.mrb[14].mxu1 }
 0x317   : > { %v783_v51 = vpop.f32.mrb[15].mxu1 }
 0x327   : > { %340 = vrot.lane.b32.xlu1 %v892_v10, %s841_s25 }
 0x393   : > { %v330_v52 = vpop.xlane.xlu1 %329 }
 0x394   : > { %v331_v53 = vsub.f32 %v322_v37, %v330_v52 }
 0x396   : > { %v332_v54 = vmul.f32 1.442695, %v331_v53 }
 0x398   : > { %815 = vpow2.f32 %v332_v54 }
 0x39b   : > { %v449_v55 = vpop.xlane.xlu0 %448 }
 0x39c   : > { %v450_v56 = vsub.f32 %v441_v42, %v449_v55 }
 0x39e   : > { %v451_v57 = vmul.f32 1.442695, %v450_v56 }
 0x3a0   : > { %817 = vpow2.f32 %v451_v57 }
 0x3a2   : > { %v816_v58 = vpop.eup %815 }
 0x3a3   : > { %v568_v59 = vpop.xlane.xlu1 %567  ;;  %v334_v60 = vsel %vm161_vm1, %v816_v58, 0.0 }
 0x3a4   : > { %v569_v61 = vsub.f32 %v560_v47, %v568_v59  ;;  %335 = vadd.xlane.f32.xlu0 %v334_v60 }
 0x3a6   : > { %v570_v62 = vmul.f32 1.442695, %v569_v61 }
 0x3a7   : > { %v341_v63 = vpop.permute.xlu1 %340 }
 0x3a8   : > { %819 = vpow2.f32 %v570_v62  ;;  %v346_v1 = vsel %vm228_vm2, %v341_v63, 0 }
 0x3a9   : > { %761 = vmatpush3.bf16.msra.mxu0 %v346_v1 }
 0x3aa   : > { %v818_v2 = vpop.eup %817  ;;  %772 = vmatprep.subr.bf16.mxu0 %v835_v0 }
 0x3ab   : > { %v453_v3 = vsel %vm161_vm1, %v818_v2, 0.0 }
 0x3ac   : > { %454 = vadd.xlane.f32.xlu1 %v453_v3 }
 0x3b2   : > { %v820_v4 = vpop.eup %819 }
 0x3b3   : > { %v572_v5 = vsel %vm161_vm1, %v820_v4, 0.0 }
 0x3b4   : > { %573 = vadd.xlane.f32.xlu0 %v572_v5 }
 0x3bd   : > { %578 = vrot.lane.b32.xlu1 %v892_v10, %s842_s26 }
 0x3ca   : > { %459 = vrot.lane.b32.xlu0 %v892_v10, %s843_s27 }
 0x431   : > { %v336_v6 = vpop.xlane.xlu0 %335 }
 0x432   : > { %821 = vrcp.f32 %v336_v6 }
 0x439   : > { %v455_v7 = vpop.xlane.xlu1 %454 }
 0x43a   : > { %823 = vrcp.f32 %v455_v7 }
 0x43c   : > { %v822_v8 = vpop.eup %821 }
 0x43d   : > { %v338_v9 = vmul.f32 %v822_v8, %v816_v58  ;;  %v579_v16 = vpop.permute.xlu1 %578 }
 0x43e   : > { %v584_v18 = vsel %vm228_vm2, %v579_v16, 0 }
 0x43f   : > { %v339_v11 = vpack.c.bf16 %v338_v9, %v338_v9 }
 0x441   : > { %v574_v12 = vpop.xlane.xlu0 %573  ;;  %763 = vmatmul.mubr.msk.bf16.vlgmr.msra.gmra.mrb[4].mxu0 %vm161_vm1, %v339_v11 }
 0x442   : > { %825 = vrcp.f32 %v574_v12  ;;  %774 = vmatprep.mubr.msk.bf16.mxu0 %vm836_vm0, %v835_v0 }
 0x444   : > { %v824_v13 = vpop.eup %823 }
 0x445   : > { %v457_v14 = vmul.f32 %v824_v13, %v818_v2  ;;  %v460_v15 = vpop.permute.xlu0 %459 }
 0x446   : > { %v465_v10 = vsel %vm228_vm2, %v460_v15, 0 }
 0x447   : > { %773 = vmatpush3.bf16.msra.mxu0 %v465_v10  ;;  %v458_v17 = vpack.c.bf16 %v457_v14, %v457_v14 }
 0x448   : > { %784 = vmatprep.subr.bf16.mxu0 %v835_v0 }
 0x44a   : > { %775 = vmatmul.mubr.msk.bf16.vlgmr.msra.gmra.mrb[8].mxu0 %vm161_vm1, %v458_v17 }
 0x44b   : > { %785 = vmatpush3.bf16.msra.mxu0 %v584_v18  ;;  %786 = vmatprep.mubr.msk.bf16.mxu0 %vm836_vm0, %v835_v0 }
 0x44c   : > { %v826_v19 = vpop.eup %825 }
 0x44d   : > { %v576_v20 = vmul.f32 %v826_v19, %v820_v4 }
 0x44f   : > { %v577_v21 = vpack.c.bf16 %v576_v20, %v576_v20 }
 0x452   : > { %787 = vmatmul.mubr.msk.bf16.vlgmr.msra.gmra.mrb[12].mxu0 %vm161_vm1, %v577_v21 }
 0x514   : > { %v382_v22 = vpop.f32.mrb[4].mxu0 }
 0x515   : > { %v723_v23 = vpack.c.bf16 %v382_v22, %v382_v22  ;;  %v764_v24 = vpop.f32.mrb[5].mxu0 }
 0x516   : > { %v385_v25 = vpop.f32.mrb[6].mxu0 }
 0x517   : > { %392 = vrot.lane.b32.xlu1 %v723_v23, %s844_s28  ;;  %v765_v26 = vpop.f32.mrb[7].mxu0 }
 0x51d   : > { %v501_v27 = vpop.f32.mrb[8].mxu0 }
 0x51e   : > { %v724_v28 = vpack.c.bf16 %v501_v27, %v501_v27  ;;  %v776_v29 = vpop.f32.mrb[9].mxu0 }
 0x51f   : > { %v504_v30 = vpop.f32.mrb[10].mxu0 }
 0x520   : > { %511 = vrot.lane.b32.xlu0 %v724_v28, %s845_s29  ;;  %v777_v0 = vpop.f32.mrb[11].mxu0 }
 0x525   : > { %v620_v31 = vpop.f32.mrb[12].mxu0 }
 0x526   : > { %v725_v32 = vpack.c.bf16 %v620_v31, %v620_v31  ;;  %v788_v33 = vpop.f32.mrb[13].mxu0 }
 0x527   : > { %v623_v34 = vpop.f32.mrb[14].mxu0 }
 0x528   : > { %630 = vrot.lane.b32.xlu1 %v725_v32, %s846_s30  ;;  %v789_v35 = vpop.f32.mrb[15].mxu0 }
 0x589   : > { %v393_v36 = vpop.permute.xlu1 %392 }
 0x58a   : > { %396 = vst.msk [vmem:[%s920_s24] sm:$0xf] %vm395_vm4, %v393_v36 }
 0x592   : > { %v512_v37 = vpop.permute.xlu0 %511 }
 0x593   : > { %515 = vst.msk [vmem:[%s920_s24] sm:$0xf] %vm514_vm5, %v512_v37 }
 0x59a   : > { %v631_v38 = vpop.permute.xlu1 %630 }
 0x59b   : > { %634 = vst.msk [vmem:[%s920_s24] sm:$0xf] %vm633_vm6, %v631_v38 }
 0x59c PF: > { %s12_s9 = sadd.s32 1, %s833_s9  }
 0x59d   : > { %p9_p4 = scmp.ge.s32.totalorder %s12_s9, 4  }
 0x59f   :  { %11 = sbr.rel (!%p9_p4) target bundleno = 1 (0x1), region = 61 }

</bundles_post_ra>
